<compile_context>
chip_gen: v6e
topology: v6e:2x2x1
jax: 0.10.0
libtpu: 0.0.40
codegen_flags: <defaults>
</compile_context>

<pallas_src>
import jax
import jax.numpy as jnp
from jax import lax
from jax.experimental import pallas as pl
from jax.experimental.pallas import tpu as pltpu


def _preprocessor_kernel(gates_ref, const_ref, meta_ref, out_ref,
                         h_ref, c_ref, feat_ref):
    # gates_ref: (T*B, 4H) f32  pre-projected gate inputs, row index = t*B + b:
    #            emb[seq[b,t]] @ W_ih[:, :H].T + W_ih.T[H+t] + b_ih + b_hh
    # const_ref: (2H+2, 4H) f32 packed constants:
    #            rows [0,H)   = W_hh.T
    #            rows [H,2H)  = fc_w.T (lane-padded to 4H)
    #            row  2H      = fc_b   (lane-padded to 4H)
    #            row  2H+1    = per-gate tanh pre-scale [.5,.5,1,.5] x ones(H)
    # meta_ref : (B+1,) i32 SMEM — meta[:B] = clamped cur_step, meta[B] = max(cur_step)
    # out_ref  : (B, H) f32
    # h/c/feat : (B, H) f32 VMEM scratch (LSTM state / selected feature)
    B, H = out_ref.shape
    T = gates_ref.shape[0] // B

    # Hoisted: W_hh in bf16 for a single-pass MXU matmul each step.
    whh_bf = const_ref[0:H, :].astype(jnp.bfloat16)          # (H, 4H)
    hscale = const_ref[2 * H + 1:2 * H + 2, :]               # (1, 4H)

    zeros = jnp.zeros((B, H), jnp.float32)
    h_ref[...] = zeros
    c_ref[...] = zeros
    feat_ref[...] = zeros

    t_max = meta_ref[B]                                      # max(cur_step), SMEM scalar

    # Fully unrolled recurrence: only the tiny h @ W_hh matmul + 2 tanh are serial.
    for t in range(T):
        def step(t=t):
            gates = gates_ref[t * B:(t + 1) * B, :]          # (B, 4H) static slice
            if t > 0:                                        # h == 0 at t == 0
                gates = gates + jnp.dot(h_ref[...].astype(jnp.bfloat16), whh_bf,
                                        preferred_element_type=jnp.float32)
            # One full-width (4H = 128 lane) EUP push for all gates:
            # sigmoid(x) = 0.5*(tanh(x/2)+1); the g-gate lanes get plain tanh.
            tg = jnp.tanh(gates * hscale)
            i_g = 0.5 * (tg[:, 0 * H:1 * H] + 1.0)
            f_g = 0.5 * (tg[:, 1 * H:2 * H] + 1.0)
            g_g = tg[:, 2 * H:3 * H]
            o_g = 0.5 * (tg[:, 3 * H:4 * H] + 1.0)
            c_new = f_g * c_ref[...] + i_g * g_g
            h_new = o_g * jnp.tanh(c_new)
            c_ref[...] = c_new
            h_ref[...] = h_new
            # feature[b] = h at t == cur_step[b]  (scalar-gated row writes)
            for b in range(B):
                @pl.when(meta_ref[b] == t)
                def _(b=b):
                    feat_ref[b:b + 1, :] = h_new[b:b + 1, :]

        if t == 0:
            step()                                           # always needed (t_max >= 0)
        else:
            pl.when(t <= t_max)(step)                        # skip dead steps exactly

    fcw = const_ref[H:2 * H, 0:H]                            # (H, H)
    fcb = const_ref[2 * H:2 * H + 1, 0:H]                    # (1, H)
    out = jnp.dot(feat_ref[...], fcw, preferred_element_type=jnp.float32) + fcb
    out_ref[...] = jnp.maximum(out, 0.0)


def preprocessor_forward(action_history, cur_step, params):
    """JAX glue + Pallas kernel. action_history: (B, L) int32, cur_step: (B,) int32."""
    B, L = action_history.shape
    T = L + 2                      # step_dim
    H = params['embedding'].shape[1]
    H4 = 4 * H

    # --- glue (plain JAX): fold the whole input projection into a small table.
    # one_hot(t) @ W_ih[:, H:].T == W_ih.T[H + t]; fold with biases per timestep.
    wih_t = params['w_ih'].astype(jnp.float32).T                   # (H+T, 4H)
    bias = (params['b_ih'] + params['b_hh']).astype(jnp.float32)   # (4H,)
    emb_proj = jnp.dot(params['embedding'].astype(jnp.float32),
                       wih_t[:H])                                  # (A+1, 4H)
    pos = wih_t[H:H + T] + bias[None, :]                           # (T, 4H)

    seq = jnp.pad(action_history + 1, ((0, 0), (1, 1)))            # (B, T)
    gx = jnp.take(emb_proj, seq, axis=0)                           # (B, T, 4H)
    gates_in = (jnp.transpose(gx, (1, 0, 2)) + pos[:, None, :]
                ).reshape(T * B, H4)                               # row = t*B + b

    # --- packed constant slab (one VMEM operand, 128 lanes wide).
    whh_t = params['w_hh'].astype(jnp.float32).T                   # (H, 4H)
    fcw_pad = jnp.zeros((H, H4), jnp.float32).at[:, :H].set(
        params['fc_w'].astype(jnp.float32).T)
    fcb_pad = jnp.zeros((1, H4), jnp.float32).at[0, :H].set(
        params['fc_b'].astype(jnp.float32))
    hscale = jnp.concatenate([jnp.full((1, H), 0.5, jnp.float32),
                              jnp.full((1, H), 0.5, jnp.float32),
                              jnp.ones((1, H), jnp.float32),
                              jnp.full((1, H), 0.5, jnp.float32)], axis=1)
    const_slab = jnp.concatenate([whh_t, fcw_pad, fcb_pad, hscale], axis=0)

    # --- cur_step (clamped, matches gather semantics) + max(cur_step) in SMEM.
    cur = jnp.clip(cur_step.astype(jnp.int32), 0, T - 1)           # (B,)
    meta = jnp.concatenate([cur, jnp.max(cur, keepdims=True)])     # (B+1,)

    vmem = pl.BlockSpec(memory_space=pltpu.MemorySpace.VMEM)
    smem = pl.BlockSpec(memory_space=pltpu.MemorySpace.SMEM)
    return pl.pallas_call(
        _preprocessor_kernel,
        out_shape=jax.ShapeDtypeStruct((B, H), jnp.float32),
        in_specs=[vmem, vmem, smem],
        out_specs=vmem,
        scratch_shapes=[pltpu.VMEM((B, H), jnp.float32),
                        pltpu.VMEM((B, H), jnp.float32),
                        pltpu.VMEM((B, H), jnp.float32)],
    )(gates_in, const_slab, meta)
    # TODO(synk): the real throughput lever is batching rollouts to B >= 128; once B is
    # large, add a leading batch-block grid axis with
    # compiler_params=pltpu.CompilerParams(dimension_semantics=("parallel",)) so v7x's
    # two TensorCores are used.  At B=2 the call is launch/latency bound and a grid
    # would only add per-step overhead.


def _reference_forward(action_history, cur_step, params):
    """Pure-JAX reference (mirrors the PyTorch module) for correctness checking."""
    B, L = action_history.shape
    T = L + 2
    H = params['embedding'].shape[1]
    seq = jnp.pad(action_history + 1, ((0, 0), (1, 1)))
    emb = jnp.take(params['embedding'], seq, axis=0)
    onehot = jnp.broadcast_to(jnp.eye(T, dtype=jnp.float32), (B, T, T))
    x = jnp.concatenate([emb, onehot], axis=-1).astype(jnp.float32)

    def cell(carry, x_t):
        h, c = carry
        gates = x_t @ params['w_ih'].T + params['b_ih'] + h @ params['w_hh'].T + params['b_hh']
        i, f, g, o = jnp.split(gates, 4, axis=-1)
        c = jax.nn.sigmoid(f) * c + jax.nn.sigmoid(i) * jnp.tanh(g)
        h = jax.nn.sigmoid(o) * jnp.tanh(c)
        return (h, c), h

    zeros = jnp.zeros((B, H), jnp.float32)
    _, h_seq = lax.scan(cell, (zeros, zeros), jnp.transpose(x, (1, 0, 2)))
    h_seq = jnp.transpose(h_seq, (1, 0, 2))                        # (B, T, H)
    feat = h_seq[jnp.arange(B), cur_step]
    return jnp.maximum(feat @ params['fc_w'].T + params['fc_b'], 0.0)


if __name__ == "__main__":
    # Shapes implied by the module: action_dim=4, history length L=8 -> step_dim T=10,
    # hidden_dim=32, batch=2.
    B, L, H, ACTION_DIM = 2, 8, 32, 4
    T = L + 2                     # step_dim
    DIN = H + T                   # LSTM input size (as in the PyTorch module)

    key = jax.random.PRNGKey(0)
    k_emb, k_wih, k_whh, k_bih, k_bhh, k_fcw, k_fcb, k_ah, k_cs = jax.random.split(key, 9)

    params = {
        'embedding': 0.1 * jax.random.normal(k_emb, (ACTION_DIM + 1, H), jnp.float32),
        'w_ih': 0.1 * jax.random.normal(k_wih, (4 * H, DIN), jnp.float32),
        'w_hh': 0.1 * jax.random.normal(k_whh, (4 * H, H), jnp.float32),
        'b_ih': 0.1 * jax.random.normal(k_bih, (4 * H,), jnp.float32),
        'b_hh': 0.1 * jax.random.normal(k_bhh, (4 * H,), jnp.float32),
        'fc_w': 0.1 * jax.random.normal(k_fcw, (H, H), jnp.float32),
        'fc_b': 0.1 * jax.random.normal(k_fcb, (H,), jnp.float32),
    }

    action_history = jax.random.randint(k_ah, (B, L), 0, ACTION_DIM, jnp.int32)
    cur_step = jax.random.randint(k_cs, (B,), 0, T, jnp.int32)

    fwd = jax.jit(preprocessor_forward)   # glue + kernel fused in one jitted step
    out = jax.block_until_ready(fwd(action_history, cur_step, params))

    ref = jax.block_until_ready(_reference_forward(action_history, cur_step, params))
    assert out.shape == (B, H) and out.dtype == jnp.float32
    # Tolerance loosened slightly: the per-step h @ W_hh matmul runs in bf16
    # (f32 accumulate), so LSTM state carries ~1e-3-level rounding over T steps.
    assert jnp.allclose(out, ref, rtol=1e-2, atol=1e-2), "mismatch vs pure-JAX reference"

    print("KERNEL_OK")
</pallas_src>

<mosaic_0001>
module attributes {stable_mosaic.version = 11 : i64} {
  func.func @_preprocessor_kernel(%arg0: memref<20x128xf32, #tpu.memory_space<vmem>>, %arg1: memref<66x128xf32, #tpu.memory_space<vmem>>, %arg2: memref<3xi32, #tpu.memory_space<smem>>, %arg3: memref<2x32xf32, #tpu.memory_space<vmem>>, %arg4: memref<2x32xf32, #tpu.memory_space<vmem>>, %arg5: memref<2x32xf32, #tpu.memory_space<vmem>>, %arg6: memref<2x32xf32, #tpu.memory_space<vmem>>) attributes {dimension_semantics = [], scalar_prefetch = 0 : i64, scratch_operands = 3 : i64, tpu.core_type = #tpu.core_type<tc>} {
    %c0 = arith.constant 0 : index
    %c0_0 = arith.constant 0 : index
    %0 = vector.load %arg1[%c0, %c0_0] : memref<66x128xf32, #tpu.memory_space<vmem>>, vector<32x128xf32>
    %1 = arith.truncf %0 : vector<32x128xf32> to vector<32x128xbf16>
    %c65 = arith.constant 65 : index
    %c0_1 = arith.constant 0 : index
    %2 = vector.load %arg1[%c65, %c0_1] : memref<66x128xf32, #tpu.memory_space<vmem>>, vector<1x128xf32>
    %cst = arith.constant 0.000000e+00 : f32
    %3 = vector.broadcast %cst : f32 to vector<2x32xf32>
    %c0_2 = arith.constant 0 : index
    %c0_3 = arith.constant 0 : index
    %4 = vector.load %arg4[%c0_2, %c0_3] : memref<2x32xf32, #tpu.memory_space<vmem>>, vector<2x32xf32>
    tpu.vector_store %arg4[%c0_2, %c0_3], %3 {strides = array<i32>} : memref<2x32xf32, #tpu.memory_space<vmem>>, vector<2x32xf32>,
    %c0_4 = arith.constant 0 : index
    %c0_5 = arith.constant 0 : index
    %5 = vector.load %arg5[%c0_4, %c0_5] : memref<2x32xf32, #tpu.memory_space<vmem>>, vector<2x32xf32>
    tpu.vector_store %arg5[%c0_4, %c0_5], %3 {strides = array<i32>} : memref<2x32xf32, #tpu.memory_space<vmem>>, vector<2x32xf32>,
    %c0_6 = arith.constant 0 : index
    %c0_7 = arith.constant 0 : index
    %6 = vector.load %arg6[%c0_6, %c0_7] : memref<2x32xf32, #tpu.memory_space<vmem>>, vector<2x32xf32>
    tpu.vector_store %arg6[%c0_6, %c0_7], %3 {strides = array<i32>} : memref<2x32xf32, #tpu.memory_space<vmem>>, vector<2x32xf32>,
    %c2 = arith.constant 2 : index
    %7 = memref.load %arg2[%c2] : memref<3xi32, #tpu.memory_space<smem>>
    %c0_8 = arith.constant 0 : index
    %c0_9 = arith.constant 0 : index
    %8 = vector.load %arg0[%c0_8, %c0_9] : memref<20x128xf32, #tpu.memory_space<vmem>>, vector<2x128xf32>
    %9 = vector.broadcast %2 : vector<1x128xf32> to vector<2x128xf32>
    %10 = arith.mulf %8, %9 : vector<2x128xf32>
    %11 = math.tanh %10 : vector<2x128xf32>
    %12 = vector.extract_strided_slice %11 {offsets = [0, 0], sizes = [2, 32], strides = [1, 1]} : vector<2x128xf32> to vector<2x32xf32>
    %cst_10 = arith.constant 1.000000e+00 : f32
    %13 = vector.broadcast %cst_10 : f32 to vector<2x32xf32>
    %14 = arith.addf %12, %13 : vector<2x32xf32>
    %cst_11 = arith.constant 5.000000e-01 : f32
    %15 = vector.broadcast %cst_11 : f32 to vector<2x32xf32>
    %16 = arith.mulf %15, %14 : vector<2x32xf32>
    %17 = vector.extract_strided_slice %11 {offsets = [0, 32], sizes = [2, 32], strides = [1, 1]} : vector<2x128xf32> to vector<2x32xf32>
    %cst_12 = arith.constant 1.000000e+00 : f32
    %18 = vector.broadcast %cst_12 : f32 to vector<2x32xf32>
    %19 = arith.addf %17, %18 : vector<2x32xf32>
    %cst_13 = arith.constant 5.000000e-01 : f32
    %20 = vector.broadcast %cst_13 : f32 to vector<2x32xf32>
    %21 = arith.mulf %20, %19 : vector<2x32xf32>
    %22 = vector.extract_strided_slice %11 {offsets = [0, 64], sizes = [2, 32], strides = [1, 1]} : vector<2x128xf32> to vector<2x32xf32>
    %23 = vector.extract_strided_slice %11 {offsets = [0, 96], sizes = [2, 32], strides = [1, 1]} : vector<2x128xf32> to vector<2x32xf32>
    %cst_14 = arith.constant 1.000000e+00 : f32
    %24 = vector.broadcast %cst_14 : f32 to vector<2x32xf32>
    %25 = arith.addf %23, %24 : vector<2x32xf32>
    %cst_15 = arith.constant 5.000000e-01 : f32
    %26 = vector.broadcast %cst_15 : f32 to vector<2x32xf32>
    %27 = arith.mulf %26, %25 : vector<2x32xf32>
    %c0_16 = arith.constant 0 : index
    %c0_17 = arith.constant 0 : index
    %28 = vector.load %arg5[%c0_16, %c0_17] : memref<2x32xf32, #tpu.memory_space<vmem>>, vector<2x32xf32>
    %29 = arith.mulf %21, %28 : vector<2x32xf32>
    %30 = arith.mulf %16, %22 : vector<2x32xf32>
    %31 = arith.addf %29, %30 : vector<2x32xf32>
    %32 = math.tanh %31 : vector<2x32xf32>
    %33 = arith.mulf %27, %32 : vector<2x32xf32>
    %c0_18 = arith.constant 0 : index
    %c0_19 = arith.constant 0 : index
    %34 = vector.load %arg5[%c0_18, %c0_19] : memref<2x32xf32, #tpu.memory_space<vmem>>, vector<2x32xf32>
    tpu.vector_store %arg5[%c0_18, %c0_19], %31 {strides = array<i32>} : memref<2x32xf32, #tpu.memory_space<vmem>>, vector<2x32xf32>,
    %c0_20 = arith.constant 0 : index
    %c0_21 = arith.constant 0 : index
    %35 = vector.load %arg4[%c0_20, %c0_21] : memref<2x32xf32, #tpu.memory_space<vmem>>, vector<2x32xf32>
    tpu.vector_store %arg4[%c0_20, %c0_21], %33 {strides = array<i32>} : memref<2x32xf32, #tpu.memory_space<vmem>>, vector<2x32xf32>,
    %c0_22 = arith.constant 0 : index
    %36 = memref.load %arg2[%c0_22] : memref<3xi32, #tpu.memory_space<smem>>
    %c0_i32 = arith.constant 0 : i32
    %37 = arith.cmpi eq, %36, %c0_i32 : i32
    %38 = arith.extui %37 : i1 to i32
    %c0_i32_23 = arith.constant 0 : i32
    %39 = arith.cmpi ne, %38, %c0_i32_23 : i32
    scf.if %39 {
      %80 = vector.extract_strided_slice %33 {offsets = [0, 0], sizes = [1, 32], strides = [1, 1]} : vector<2x32xf32> to vector<1x32xf32>
      %c0_43 = arith.constant 0 : index
      %c0_44 = arith.constant 0 : index
      %81 = vector.load %arg6[%c0_43, %c0_44] : memref<2x32xf32, #tpu.memory_space<vmem>>, vector<1x32xf32>
      tpu.vector_store %arg6[%c0_43, %c0_44], %80 {strides = array<i32>} : memref<2x32xf32, #tpu.memory_space<vmem>>, vector<1x32xf32>,
    } else {
    }
    %c1 = arith.constant 1 : index
    %40 = memref.load %arg2[%c1] : memref<3xi32, #tpu.memory_space<smem>>
    %c0_i32_24 = arith.constant 0 : i32
    %41 = arith.cmpi eq, %40, %c0_i32_24 : i32
    %42 = arith.extui %41 : i1 to i32
    %c0_i32_25 = arith.constant 0 : i32
    %43 = arith.cmpi ne, %42, %c0_i32_25 : i32
    scf.if %43 {
      %80 = vector.extract_strided_slice %33 {offsets = [1, 0], sizes = [1, 32], strides = [1, 1]} : vector<2x32xf32> to vector<1x32xf32>
      %c1_43 = arith.constant 1 : index
      %c0_44 = arith.constant 0 : index
      %81 = vector.load %arg6[%c1_43, %c0_44] : memref<2x32xf32, #tpu.memory_space<vmem>>, vector<1x32xf32>
      tpu.vector_store %arg6[%c1_43, %c0_44], %80 {strides = array<i32>} : memref<2x32xf32, #tpu.memory_space<vmem>>, vector<1x32xf32>,
    } else {
    }
    %c1_i32 = arith.constant 1 : i32
    %44 = arith.cmpi sge, %7, %c1_i32 : i32
    %45 = arith.extui %44 : i1 to i32
    %c0_i32_26 = arith.constant 0 : i32
    %46 = arith.cmpi ne, %45, %c0_i32_26 : i32
    scf.if %46 {
      %c2_43 = arith.constant 2 : index
      %c0_44 = arith.constant 0 : index
      %80 = vector.load %arg0[%c2_43, %c0_44] : memref<20x128xf32, #tpu.memory_space<vmem>>, vector<2x128xf32>
      %c0_45 = arith.constant 0 : index
      %c0_46 = arith.constant 0 : index
      %81 = vector.load %arg4[%c0_45, %c0_46] : memref<2x32xf32, #tpu.memory_space<vmem>>, vector<2x32xf32>
      %82 = arith.truncf %81 : vector<2x32xf32> to vector<2x32xbf16>
      %cst_47 = arith.constant dense<0.000000e+00> : vector<2x128xf32>
      %83 = tpu.matmul %82, %1, %cst_47 {dimension_numbers = #tpu.dot_dimension_numbers<[1], [0], [0], [1], [0, 0, 1, 1], [], []>} : vector<2x32xbf16>, vector<32x128xbf16>, vector<2x128xf32> -> vector<2x128xf32>
      %84 = arith.addf %80, %83 : vector<2x128xf32>
      %85 = vector.broadcast %2 : vector<1x128xf32> to vector<2x128xf32>
      %86 = arith.mulf %84, %85 : vector<2x128xf32>
      %87 = math.tanh %86 : vector<2x128xf32>
      %88 = vector.extract_strided_slice %87 {offsets = [0, 0], sizes = [2, 32], strides = [1, 1]} : vector<2x128xf32> to vector<2x32xf32>
      %cst_48 = arith.constant 1.000000e+00 : f32
      %89 = vector.broadcast %cst_48 : f32 to vector<2x32xf32>
      %90 = arith.addf %88, %89 : vector<2x32xf32>
      %cst_49 = arith.constant 5.000000e-01 : f32
      %91 = vector.broadcast %cst_49 : f32 to vector<2x32xf32>
      %92 = arith.mulf %91, %90 : vector<2x32xf32>
      %93 = vector.extract_strided_slice %87 {offsets = [0, 32], sizes = [2, 32], strides = [1, 1]} : vector<2x128xf32> to vector<2x32xf32>
      %cst_50 = arith.constant 1.000000e+00 : f32
      %94 = vector.broadcast %cst_50 : f32 to vector<2x32xf32>
      %95 = arith.addf %93, %94 : vector<2x32xf32>
      %cst_51 = arith.constant 5.000000e-01 : f32
      %96 = vector.broadcast %cst_51 : f32 to vector<2x32xf32>
      %97 = arith.mulf %96, %95 : vector<2x32xf32>
      %98 = vector.extract_strided_slice %87 {offsets = [0, 64], sizes = [2, 32], strides = [1, 1]} : vector<2x128xf32> to vector<2x32xf32>
      %99 = vector.extract_strided_slice %87 {offsets = [0, 96], sizes = [2, 32], strides = [1, 1]} : vector<2x128xf32> to vector<2x32xf32>
      %cst_52 = arith.constant 1.000000e+00 : f32
      %100 = vector.broadcast %cst_52 : f32 to vector<2x32xf32>
      %101 = arith.addf %99, %100 : vector<2x32xf32>
      %cst_53 = arith.constant 5.000000e-01 : f32
      %102 = vector.broadcast %cst_53 : f32 to vector<2x32xf32>
      %103 = arith.mulf %102, %101 : vector<2x32xf32>
      %c0_54 = arith.constant 0 : index
      %c0_55 = arith.constant 0 : index
      %104 = vector.load %arg5[%c0_54, %c0_55] : memref<2x32xf32, #tpu.memory_space<vmem>>, vector<2x32xf32>
      %105 = arith.mulf %97, %104 : vector<2x32xf32>
      %106 = arith.mulf %92, %98 : vector<2x32xf32>
      %107 = arith.addf %105, %106 : vector<2x32xf32>
      %108 = math.tanh %107 : vector<2x32xf32>
      %109 = arith.mulf %103, %108 : vector<2x32xf32>
      %c0_56 = arith.constant 0 : index
      %c0_57 = arith.constant 0 : index
      %110 = vector.load %arg5[%c0_56, %c0_57] : memref<2x32xf32, #tpu.memory_space<vmem>>, vector<2x32xf32>
      tpu.vector_store %arg5[%c0_56, %c0_57], %107 {strides = array<i32>} : memref<2x32xf32, #tpu.memory_space<vmem>>, vector<2x32xf32>,
      %c0_58 = arith.constant 0 : index
      %c0_59 = arith.constant 0 : index
      %111 = vector.load %arg4[%c0_58, %c0_59] : memref<2x32xf32, #tpu.memory_space<vmem>>, vector<2x32xf32>
      tpu.vector_store %arg4[%c0_58, %c0_59], %109 {strides = array<i32>} : memref<2x32xf32, #tpu.memory_space<vmem>>, vector<2x32xf32>,
      %c0_60 = arith.constant 0 : index
      %112 = memref.load %arg2[%c0_60] : memref<3xi32, #tpu.memory_space<smem>>
      %c1_i32_61 = arith.constant 1 : i32
      %113 = arith.cmpi eq, %112, %c1_i32_61 : i32
      %114 = arith.extui %113 : i1 to i32
      %c0_i32_62 = arith.constant 0 : i32
      %115 = arith.cmpi ne, %114, %c0_i32_62 : i32
      scf.if %115 {
        %120 = vector.extract_strided_slice %109 {offsets = [0, 0], sizes = [1, 32], strides = [1, 1]} : vector<2x32xf32> to vector<1x32xf32>
        %c0_66 = arith.constant 0 : index
        %c0_67 = arith.constant 0 : index
        %121 = vector.load %arg6[%c0_66, %c0_67] : memref<2x32xf32, #tpu.memory_space<vmem>>, vector<1x32xf32>
        tpu.vector_store %arg6[%c0_66, %c0_67], %120 {strides = array<i32>} : memref<2x32xf32, #tpu.memory_space<vmem>>, vector<1x32xf32>,
      } else {
      }
      %c1_63 = arith.constant 1 : index
      %116 = memref.load %arg2[%c1_63] : memref<3xi32, #tpu.memory_space<smem>>
      %c1_i32_64 = arith.constant 1 : i32
      %117 = arith.cmpi eq, %116, %c1_i32_64 : i32
      %118 = arith.extui %117 : i1 to i32
      %c0_i32_65 = arith.constant 0 : i32
      %119 = arith.cmpi ne, %118, %c0_i32_65 : i32
      scf.if %119 {
        %120 = vector.extract_strided_slice %109 {offsets = [1, 0], sizes = [1, 32], strides = [1, 1]} : vector<2x32xf32> to vector<1x32xf32>
        %c1_66 = arith.constant 1 : index
        %c0_67 = arith.constant 0 : index
        %121 = vector.load %arg6[%c1_66, %c0_67] : memref<2x32xf32, #tpu.memory_space<vmem>>, vector<1x32xf32>
        tpu.vector_store %arg6[%c1_66, %c0_67], %120 {strides = array<i32>} : memref<2x32xf32, #tpu.memory_space<vmem>>, vector<1x32xf32>,
      } else {
      }
    } else {
    }
    %c2_i32 = arith.constant 2 : i32
    %47 = arith.cmpi sge, %7, %c2_i32 : i32
    %48 = arith.extui %47 : i1 to i32
    %c0_i32_27 = arith.constant 0 : i32
    %49 = arith.cmpi ne, %48, %c0_i32_27 : i32
    scf.if %49 {
      %c4 = arith.constant 4 : index
      %c0_43 = arith.constant 0 : index
      %80 = vector.load %arg0[%c4, %c0_43] : memref<20x128xf32, #tpu.memory_space<vmem>>, vector<2x128xf32>
      %c0_44 = arith.constant 0 : index
      %c0_45 = arith.constant 0 : index
      %81 = vector.load %arg4[%c0_44, %c0_45] : memref<2x32xf32, #tpu.memory_space<vmem>>, vector<2x32xf32>
      %82 = arith.truncf %81 : vector<2x32xf32> to vector<2x32xbf16>
      %cst_46 = arith.constant dense<0.000000e+00> : vector<2x128xf32>
      %83 = tpu.matmul %82, %1, %cst_46 {dimension_numbers = #tpu.dot_dimension_numbers<[1], [0], [0], [1], [0, 0, 1, 1], [], []>} : vector<2x32xbf16>, vector<32x128xbf16>, vector<2x128xf32> -> vector<2x128xf32>
      %84 = arith.addf %80, %83 : vector<2x128xf32>
      %85 = vector.broadcast %2 : vector<1x128xf32> to vector<2x128xf32>
      %86 = arith.mulf %84, %85 : vector<2x128xf32>
      %87 = math.tanh %86 : vector<2x128xf32>
      %88 = vector.extract_strided_slice %87 {offsets = [0, 0], sizes = [2, 32], strides = [1, 1]} : vector<2x128xf32> to vector<2x32xf32>
      %cst_47 = arith.constant 1.000000e+00 : f32
      %89 = vector.broadcast %cst_47 : f32 to vector<2x32xf32>
      %90 = arith.addf %88, %89 : vector<2x32xf32>
      %cst_48 = arith.constant 5.000000e-01 : f32
      %91 = vector.broadcast %cst_48 : f32 to vector<2x32xf32>
      %92 = arith.mulf %91, %90 : vector<2x32xf32>
      %93 = vector.extract_strided_slice %87 {offsets = [0, 32], sizes = [2, 32], strides = [1, 1]} : vector<2x128xf32> to vector<2x32xf32>
      %cst_49 = arith.constant 1.000000e+00 : f32
      %94 = vector.broadcast %cst_49 : f32 to vector<2x32xf32>
      %95 = arith.addf %93, %94 : vector<2x32xf32>
      %cst_50 = arith.constant 5.000000e-01 : f32
      %96 = vector.broadcast %cst_50 : f32 to vector<2x32xf32>
      %97 = arith.mulf %96, %95 : vector<2x32xf32>
      %98 = vector.extract_strided_slice %87 {offsets = [0, 64], sizes = [2, 32], strides = [1, 1]} : vector<2x128xf32> to vector<2x32xf32>
      %99 = vector.extract_strided_slice %87 {offsets = [0, 96], sizes = [2, 32], strides = [1, 1]} : vector<2x128xf32> to vector<2x32xf32>
      %cst_51 = arith.constant 1.000000e+00 : f32
      %100 = vector.broadcast %cst_51 : f32 to vector<2x32xf32>
      %101 = arith.addf %99, %100 : vector<2x32xf32>
      %cst_52 = arith.constant 5.000000e-01 : f32
      %102 = vector.broadcast %cst_52 : f32 to vector<2x32xf32>
      %103 = arith.mulf %102, %101 : vector<2x32xf32>
      %c0_53 = arith.constant 0 : index
      %c0_54 = arith.constant 0 : index
      %104 = vector.load %arg5[%c0_53, %c0_54] : memref<2x32xf32, #tpu.memory_space<vmem>>, vector<2x32xf32>
      %105 = arith.mulf %97, %104 : vector<2x32xf32>
      %106 = arith.mulf %92, %98 : vector<2x32xf32>
      %107 = arith.addf %105, %106 : vector<2x32xf32>
      %108 = math.tanh %107 : vector<2x32xf32>
      %109 = arith.mulf %103, %108 : vector<2x32xf32>
      %c0_55 = arith.constant 0 : index
      %c0_56 = arith.constant 0 : index
      %110 = vector.load %arg5[%c0_55, %c0_56] : memref<2x32xf32, #tpu.memory_space<vmem>>, vector<2x32xf32>
      tpu.vector_store %arg5[%c0_55, %c0_56], %107 {strides = array<i32>} : memref<2x32xf32, #tpu.memory_space<vmem>>, vector<2x32xf32>,
      %c0_57 = arith.constant 0 : index
      %c0_58 = arith.constant 0 : index
      %111 = vector.load %arg4[%c0_57, %c0_58] : memref<2x32xf32, #tpu.memory_space<vmem>>, vector<2x32xf32>
      tpu.vector_store %arg4[%c0_57, %c0_58], %109 {strides = array<i32>} : memref<2x32xf32, #tpu.memory_space<vmem>>, vector<2x32xf32>,
      %c0_59 = arith.constant 0 : index
      %112 = memref.load %arg2[%c0_59] : memref<3xi32, #tpu.memory_space<smem>>
      %c2_i32_60 = arith.constant 2 : i32
      %113 = arith.cmpi eq, %112, %c2_i32_60 : i32
      %114 = arith.extui %113 : i1 to i32
      %c0_i32_61 = arith.constant 0 : i32
      %115 = arith.cmpi ne, %114, %c0_i32_61 : i32
      scf.if %115 {
        %120 = vector.extract_strided_slice %109 {offsets = [0, 0], sizes = [1, 32], strides = [1, 1]} : vector<2x32xf32> to vector<1x32xf32>
        %c0_65 = arith.constant 0 : index
        %c0_66 = arith.constant 0 : index
        %121 = vector.load %arg6[%c0_65, %c0_66] : memref<2x32xf32, #tpu.memory_space<vmem>>, vector<1x32xf32>
        tpu.vector_store %arg6[%c0_65, %c0_66], %120 {strides = array<i32>} : memref<2x32xf32, #tpu.memory_space<vmem>>, vector<1x32xf32>,
      } else {
      }
      %c1_62 = arith.constant 1 : index
      %116 = memref.load %arg2[%c1_62] : memref<3xi32, #tpu.memory_space<smem>>
      %c2_i32_63 = arith.constant 2 : i32
      %117 = arith.cmpi eq, %116, %c2_i32_63 : i32
      %118 = arith.extui %117 : i1 to i32
      %c0_i32_64 = arith.constant 0 : i32
      %119 = arith.cmpi ne, %118, %c0_i32_64 : i32
      scf.if %119 {
        %120 = vector.extract_strided_slice %109 {offsets = [1, 0], sizes = [1, 32], strides = [1, 1]} : vector<2x32xf32> to vector<1x32xf32>
        %c1_65 = arith.constant 1 : index
        %c0_66 = arith.constant 0 : index
        %121 = vector.load %arg6[%c1_65, %c0_66] : memref<2x32xf32, #tpu.memory_space<vmem>>, vector<1x32xf32>
        tpu.vector_store %arg6[%c1_65, %c0_66], %120 {strides = array<i32>} : memref<2x32xf32, #tpu.memory_space<vmem>>, vector<1x32xf32>,
      } else {
      }
    } else {
    }
    %c3_i32 = arith.constant 3 : i32
    %50 = arith.cmpi sge, %7, %c3_i32 : i32
    %51 = arith.extui %50 : i1 to i32
    %c0_i32_28 = arith.constant 0 : i32
    %52 = arith.cmpi ne, %51, %c0_i32_28 : i32
    scf.if %52 {
      %c6 = arith.constant 6 : index
      %c0_43 = arith.constant 0 : index
      %80 = vector.load %arg0[%c6, %c0_43] : memref<20x128xf32, #tpu.memory_space<vmem>>, vector<2x128xf32>
      %c0_44 = arith.constant 0 : index
      %c0_45 = arith.constant 0 : index
      %81 = vector.load %arg4[%c0_44, %c0_45] : memref<2x32xf32, #tpu.memory_space<vmem>>, vector<2x32xf32>
      %82 = arith.truncf %81 : vector<2x32xf32> to vector<2x32xbf16>
      %cst_46 = arith.constant dense<0.000000e+00> : vector<2x128xf32>
      %83 = tpu.matmul %82, %1, %cst_46 {dimension_numbers = #tpu.dot_dimension_numbers<[1], [0], [0], [1], [0, 0, 1, 1], [], []>} : vector<2x32xbf16>, vector<32x128xbf16>, vector<2x128xf32> -> vector<2x128xf32>
      %84 = arith.addf %80, %83 : vector<2x128xf32>
      %85 = vector.broadcast %2 : vector<1x128xf32> to vector<2x128xf32>
      %86 = arith.mulf %84, %85 : vector<2x128xf32>
      %87 = math.tanh %86 : vector<2x128xf32>
      %88 = vector.extract_strided_slice %87 {offsets = [0, 0], sizes = [2, 32], strides = [1, 1]} : vector<2x128xf32> to vector<2x32xf32>
      %cst_47 = arith.constant 1.000000e+00 : f32
      %89 = vector.broadcast %cst_47 : f32 to vector<2x32xf32>
      %90 = arith.addf %88, %89 : vector<2x32xf32>
      %cst_48 = arith.constant 5.000000e-01 : f32
      %91 = vector.broadcast %cst_48 : f32 to vector<2x32xf32>
      %92 = arith.mulf %91, %90 : vector<2x32xf32>
      %93 = vector.extract_strided_slice %87 {offsets = [0, 32], sizes = [2, 32], strides = [1, 1]} : vector<2x128xf32> to vector<2x32xf32>
      %cst_49 = arith.constant 1.000000e+00 : f32
      %94 = vector.broadcast %cst_49 : f32 to vector<2x32xf32>
      %95 = arith.addf %93, %94 : vector<2x32xf32>
      %cst_50 = arith.constant 5.000000e-01 : f32
      %96 = vector.broadcast %cst_50 : f32 to vector<2x32xf32>
      %97 = arith.mulf %96, %95 : vector<2x32xf32>
      %98 = vector.extract_strided_slice %87 {offsets = [0, 64], sizes = [2, 32], strides = [1, 1]} : vector<2x128xf32> to vector<2x32xf32>
      %99 = vector.extract_strided_slice %87 {offsets = [0, 96], sizes = [2, 32], strides = [1, 1]} : vector<2x128xf32> to vector<2x32xf32>
      %cst_51 = arith.constant 1.000000e+00 : f32
      %100 = vector.broadcast %cst_51 : f32 to vector<2x32xf32>
      %101 = arith.addf %99, %100 : vector<2x32xf32>
      %cst_52 = arith.constant 5.000000e-01 : f32
      %102 = vector.broadcast %cst_52 : f32 to vector<2x32xf32>
      %103 = arith.mulf %102, %101 : vector<2x32xf32>
      %c0_53 = arith.constant 0 : index
      %c0_54 = arith.constant 0 : index
      %104 = vector.load %arg5[%c0_53, %c0_54] : memref<2x32xf32, #tpu.memory_space<vmem>>, vector<2x32xf32>
      %105 = arith.mulf %97, %104 : vector<2x32xf32>
      %106 = arith.mulf %92, %98 : vector<2x32xf32>
      %107 = arith.addf %105, %106 : vector<2x32xf32>
      %108 = math.tanh %107 : vector<2x32xf32>
      %109 = arith.mulf %103, %108 : vector<2x32xf32>
      %c0_55 = arith.constant 0 : index
      %c0_56 = arith.constant 0 : index
      %110 = vector.load %arg5[%c0_55, %c0_56] : memref<2x32xf32, #tpu.memory_space<vmem>>, vector<2x32xf32>
      tpu.vector_store %arg5[%c0_55, %c0_56], %107 {strides = array<i32>} : memref<2x32xf32, #tpu.memory_space<vmem>>, vector<2x32xf32>,
      %c0_57 = arith.constant 0 : index
      %c0_58 = arith.constant 0 : index
      %111 = vector.load %arg4[%c0_57, %c0_58] : memref<2x32xf32, #tpu.memory_space<vmem>>, vector<2x32xf32>
      tpu.vector_store %arg4[%c0_57, %c0_58], %109 {strides = array<i32>} : memref<2x32xf32, #tpu.memory_space<vmem>>, vector<2x32xf32>,
      %c0_59 = arith.constant 0 : index
      %112 = memref.load %arg2[%c0_59] : memref<3xi32, #tpu.memory_space<smem>>
      %c3_i32_60 = arith.constant 3 : i32
      %113 = arith.cmpi eq, %112, %c3_i32_60 : i32
      %114 = arith.extui %113 : i1 to i32
      %c0_i32_61 = arith.constant 0 : i32
      %115 = arith.cmpi ne, %114, %c0_i32_61 : i32
      scf.if %115 {
        %120 = vector.extract_strided_slice %109 {offsets = [0, 0], sizes = [1, 32], strides = [1, 1]} : vector<2x32xf32> to vector<1x32xf32>
        %c0_65 = arith.constant 0 : index
        %c0_66 = arith.constant 0 : index
        %121 = vector.load %arg6[%c0_65, %c0_66] : memref<2x32xf32, #tpu.memory_space<vmem>>, vector<1x32xf32>
        tpu.vector_store %arg6[%c0_65, %c0_66], %120 {strides = array<i32>} : memref<2x32xf32, #tpu.memory_space<vmem>>, vector<1x32xf32>,
      } else {
      }
      %c1_62 = arith.constant 1 : index
      %116 = memref.load %arg2[%c1_62] : memref<3xi32, #tpu.memory_space<smem>>
      %c3_i32_63 = arith.constant 3 : i32
      %117 = arith.cmpi eq, %116, %c3_i32_63 : i32
      %118 = arith.extui %117 : i1 to i32
      %c0_i32_64 = arith.constant 0 : i32
      %119 = arith.cmpi ne, %118, %c0_i32_64 : i32
      scf.if %119 {
        %120 = vector.extract_strided_slice %109 {offsets = [1, 0], sizes = [1, 32], strides = [1, 1]} : vector<2x32xf32> to vector<1x32xf32>
        %c1_65 = arith.constant 1 : index
        %c0_66 = arith.constant 0 : index
        %121 = vector.load %arg6[%c1_65, %c0_66] : memref<2x32xf32, #tpu.memory_space<vmem>>, vector<1x32xf32>
        tpu.vector_store %arg6[%c1_65, %c0_66], %120 {strides = array<i32>} : memref<2x32xf32, #tpu.memory_space<vmem>>, vector<1x32xf32>,
      } else {
      }
    } else {
    }
    %c4_i32 = arith.constant 4 : i32
    %53 = arith.cmpi sge, %7, %c4_i32 : i32
    %54 = arith.extui %53 : i1 to i32
    %c0_i32_29 = arith.constant 0 : i32
    %55 = arith.cmpi ne, %54, %c0_i32_29 : i32
    scf.if %55 {
      %c8 = arith.constant 8 : index
      %c0_43 = arith.constant 0 : index
      %80 = vector.load %arg0[%c8, %c0_43] : memref<20x128xf32, #tpu.memory_space<vmem>>, vector<2x128xf32>
      %c0_44 = arith.constant 0 : index
      %c0_45 = arith.constant 0 : index
      %81 = vector.load %arg4[%c0_44, %c0_45] : memref<2x32xf32, #tpu.memory_space<vmem>>, vector<2x32xf32>
      %82 = arith.truncf %81 : vector<2x32xf32> to vector<2x32xbf16>
      %cst_46 = arith.constant dense<0.000000e+00> : vector<2x128xf32>
      %83 = tpu.matmul %82, %1, %cst_46 {dimension_numbers = #tpu.dot_dimension_numbers<[1], [0], [0], [1], [0, 0, 1, 1], [], []>} : vector<2x32xbf16>, vector<32x128xbf16>, vector<2x128xf32> -> vector<2x128xf32>
      %84 = arith.addf %80, %83 : vector<2x128xf32>
      %85 = vector.broadcast %2 : vector<1x128xf32> to vector<2x128xf32>
      %86 = arith.mulf %84, %85 : vector<2x128xf32>
      %87 = math.tanh %86 : vector<2x128xf32>
      %88 = vector.extract_strided_slice %87 {offsets = [0, 0], sizes = [2, 32], strides = [1, 1]} : vector<2x128xf32> to vector<2x32xf32>
      %cst_47 = arith.constant 1.000000e+00 : f32
      %89 = vector.broadcast %cst_47 : f32 to vector<2x32xf32>
      %90 = arith.addf %88, %89 : vector<2x32xf32>
      %cst_48 = arith.constant 5.000000e-01 : f32
      %91 = vector.broadcast %cst_48 : f32 to vector<2x32xf32>
      %92 = arith.mulf %91, %90 : vector<2x32xf32>
      %93 = vector.extract_strided_slice %87 {offsets = [0, 32], sizes = [2, 32], strides = [1, 1]} : vector<2x128xf32> to vector<2x32xf32>
      %cst_49 = arith.constant 1.000000e+00 : f32
      %94 = vector.broadcast %cst_49 : f32 to vector<2x32xf32>
      %95 = arith.addf %93, %94 : vector<2x32xf32>
      %cst_50 = arith.constant 5.000000e-01 : f32
      %96 = vector.broadcast %cst_50 : f32 to vector<2x32xf32>
      %97 = arith.mulf %96, %95 : vector<2x32xf32>
      %98 = vector.extract_strided_slice %87 {offsets = [0, 64], sizes = [2, 32], strides = [1, 1]} : vector<2x128xf32> to vector<2x32xf32>
      %99 = vector.extract_strided_slice %87 {offsets = [0, 96], sizes = [2, 32], strides = [1, 1]} : vector<2x128xf32> to vector<2x32xf32>
      %cst_51 = arith.constant 1.000000e+00 : f32
      %100 = vector.broadcast %cst_51 : f32 to vector<2x32xf32>
      %101 = arith.addf %99, %100 : vector<2x32xf32>
      %cst_52 = arith.constant 5.000000e-01 : f32
      %102 = vector.broadcast %cst_52 : f32 to vector<2x32xf32>
      %103 = arith.mulf %102, %101 : vector<2x32xf32>
      %c0_53 = arith.constant 0 : index
      %c0_54 = arith.constant 0 : index
      %104 = vector.load %arg5[%c0_53, %c0_54] : memref<2x32xf32, #tpu.memory_space<vmem>>, vector<2x32xf32>
      %105 = arith.mulf %97, %104 : vector<2x32xf32>
      %106 = arith.mulf %92, %98 : vector<2x32xf32>
      %107 = arith.addf %105, %106 : vector<2x32xf32>
      %108 = math.tanh %107 : vector<2x32xf32>
      %109 = arith.mulf %103, %108 : vector<2x32xf32>
      %c0_55 = arith.constant 0 : index
      %c0_56 = arith.constant 0 : index
      %110 = vector.load %arg5[%c0_55, %c0_56] : memref<2x32xf32, #tpu.memory_space<vmem>>, vector<2x32xf32>
      tpu.vector_store %arg5[%c0_55, %c0_56], %107 {strides = array<i32>} : memref<2x32xf32, #tpu.memory_space<vmem>>, vector<2x32xf32>,
      %c0_57 = arith.constant 0 : index
      %c0_58 = arith.constant 0 : index
      %111 = vector.load %arg4[%c0_57, %c0_58] : memref<2x32xf32, #tpu.memory_space<vmem>>, vector<2x32xf32>
      tpu.vector_store %arg4[%c0_57, %c0_58], %109 {strides = array<i32>} : memref<2x32xf32, #tpu.memory_space<vmem>>, vector<2x32xf32>,
      %c0_59 = arith.constant 0 : index
      %112 = memref.load %arg2[%c0_59] : memref<3xi32, #tpu.memory_space<smem>>
      %c4_i32_60 = arith.constant 4 : i32
      %113 = arith.cmpi eq, %112, %c4_i32_60 : i32
      %114 = arith.extui %113 : i1 to i32
      %c0_i32_61 = arith.constant 0 : i32
      %115 = arith.cmpi ne, %114, %c0_i32_61 : i32
      scf.if %115 {
        %120 = vector.extract_strided_slice %109 {offsets = [0, 0], sizes = [1, 32], strides = [1, 1]} : vector<2x32xf32> to vector<1x32xf32>
        %c0_65 = arith.constant 0 : index
        %c0_66 = arith.constant 0 : index
        %121 = vector.load %arg6[%c0_65, %c0_66] : memref<2x32xf32, #tpu.memory_space<vmem>>, vector<1x32xf32>
        tpu.vector_store %arg6[%c0_65, %c0_66], %120 {strides = array<i32>} : memref<2x32xf32, #tpu.memory_space<vmem>>, vector<1x32xf32>,
      } else {
      }
      %c1_62 = arith.constant 1 : index
      %116 = memref.load %arg2[%c1_62] : memref<3xi32, #tpu.memory_space<smem>>
      %c4_i32_63 = arith.constant 4 : i32
      %117 = arith.cmpi eq, %116, %c4_i32_63 : i32
      %118 = arith.extui %117 : i1 to i32
      %c0_i32_64 = arith.constant 0 : i32
      %119 = arith.cmpi ne, %118, %c0_i32_64 : i32
      scf.if %119 {
        %120 = vector.extract_strided_slice %109 {offsets = [1, 0], sizes = [1, 32], strides = [1, 1]} : vector<2x32xf32> to vector<1x32xf32>
        %c1_65 = arith.constant 1 : index
        %c0_66 = arith.constant 0 : index
        %121 = vector.load %arg6[%c1_65, %c0_66] : memref<2x32xf32, #tpu.memory_space<vmem>>, vector<1x32xf32>
        tpu.vector_store %arg6[%c1_65, %c0_66], %120 {strides = array<i32>} : memref<2x32xf32, #tpu.memory_space<vmem>>, vector<1x32xf32>,
      } else {
      }
    } else {
    }
    %c5_i32 = arith.constant 5 : i32
    %56 = arith.cmpi sge, %7, %c5_i32 : i32
    %57 = arith.extui %56 : i1 to i32
    %c0_i32_30 = arith.constant 0 : i32
    %58 = arith.cmpi ne, %57, %c0_i32_30 : i32
    scf.if %58 {
      %c10 = arith.constant 10 : index
      %c0_43 = arith.constant 0 : index
      %80 = vector.load %arg0[%c10, %c0_43] : memref<20x128xf32, #tpu.memory_space<vmem>>, vector<2x128xf32>
      %c0_44 = arith.constant 0 : index
      %c0_45 = arith.constant 0 : index
      %81 = vector.load %arg4[%c0_44, %c0_45] : memref<2x32xf32, #tpu.memory_space<vmem>>, vector<2x32xf32>
      %82 = arith.truncf %81 : vector<2x32xf32> to vector<2x32xbf16>
      %cst_46 = arith.constant dense<0.000000e+00> : vector<2x128xf32>
      %83 = tpu.matmul %82, %1, %cst_46 {dimension_numbers = #tpu.dot_dimension_numbers<[1], [0], [0], [1], [0, 0, 1, 1], [], []>} : vector<2x32xbf16>, vector<32x128xbf16>, vector<2x128xf32> -> vector<2x128xf32>
      %84 = arith.addf %80, %83 : vector<2x128xf32>
      %85 = vector.broadcast %2 : vector<1x128xf32> to vector<2x128xf32>
      %86 = arith.mulf %84, %85 : vector<2x128xf32>
      %87 = math.tanh %86 : vector<2x128xf32>
      %88 = vector.extract_strided_slice %87 {offsets = [0, 0], sizes = [2, 32], strides = [1, 1]} : vector<2x128xf32> to vector<2x32xf32>
      %cst_47 = arith.constant 1.000000e+00 : f32
      %89 = vector.broadcast %cst_47 : f32 to vector<2x32xf32>
      %90 = arith.addf %88, %89 : vector<2x32xf32>
      %cst_48 = arith.constant 5.000000e-01 : f32
      %91 = vector.broadcast %cst_48 : f32 to vector<2x32xf32>
      %92 = arith.mulf %91, %90 : vector<2x32xf32>
      %93 = vector.extract_strided_slice %87 {offsets = [0, 32], sizes = [2, 32], strides = [1, 1]} : vector<2x128xf32> to vector<2x32xf32>
      %cst_49 = arith.constant 1.000000e+00 : f32
      %94 = vector.broadcast %cst_49 : f32 to vector<2x32xf32>
      %95 = arith.addf %93, %94 : vector<2x32xf32>
      %cst_50 = arith.constant 5.000000e-01 : f32
      %96 = vector.broadcast %cst_50 : f32 to vector<2x32xf32>
      %97 = arith.mulf %96, %95 : vector<2x32xf32>
      %98 = vector.extract_strided_slice %87 {offsets = [0, 64], sizes = [2, 32], strides = [1, 1]} : vector<2x128xf32> to vector<2x32xf32>
      %99 = vector.extract_strided_slice %87 {offsets = [0, 96], sizes = [2, 32], strides = [1, 1]} : vector<2x128xf32> to vector<2x32xf32>
      %cst_51 = arith.constant 1.000000e+00 : f32
      %100 = vector.broadcast %cst_51 : f32 to vector<2x32xf32>
      %101 = arith.addf %99, %100 : vector<2x32xf32>
      %cst_52 = arith.constant 5.000000e-01 : f32
      %102 = vector.broadcast %cst_52 : f32 to vector<2x32xf32>
      %103 = arith.mulf %102, %101 : vector<2x32xf32>
      %c0_53 = arith.constant 0 : index
      %c0_54 = arith.constant 0 : index
      %104 = vector.load %arg5[%c0_53, %c0_54] : memref<2x32xf32, #tpu.memory_space<vmem>>, vector<2x32xf32>
      %105 = arith.mulf %97, %104 : vector<2x32xf32>
      %106 = arith.mulf %92, %98 : vector<2x32xf32>
      %107 = arith.addf %105, %106 : vector<2x32xf32>
      %108 = math.tanh %107 : vector<2x32xf32>
      %109 = arith.mulf %103, %108 : vector<2x32xf32>
      %c0_55 = arith.constant 0 : index
      %c0_56 = arith.constant 0 : index
      %110 = vector.load %arg5[%c0_55, %c0_56] : memref<2x32xf32, #tpu.memory_space<vmem>>, vector<2x32xf32>
      tpu.vector_store %arg5[%c0_55, %c0_56], %107 {strides = array<i32>} : memref<2x32xf32, #tpu.memory_space<vmem>>, vector<2x32xf32>,
      %c0_57 = arith.constant 0 : index
      %c0_58 = arith.constant 0 : index
      %111 = vector.load %arg4[%c0_57, %c0_58] : memref<2x32xf32, #tpu.memory_space<vmem>>, vector<2x32xf32>
      tpu.vector_store %arg4[%c0_57, %c0_58], %109 {strides = array<i32>} : memref<2x32xf32, #tpu.memory_space<vmem>>, vector<2x32xf32>,
      %c0_59 = arith.constant 0 : index
      %112 = memref.load %arg2[%c0_59] : memref<3xi32, #tpu.memory_space<smem>>
      %c5_i32_60 = arith.constant 5 : i32
      %113 = arith.cmpi eq, %112, %c5_i32_60 : i32
      %114 = arith.extui %113 : i1 to i32
      %c0_i32_61 = arith.constant 0 : i32
      %115 = arith.cmpi ne, %114, %c0_i32_61 : i32
      scf.if %115 {
        %120 = vector.extract_strided_slice %109 {offsets = [0, 0], sizes = [1, 32], strides = [1, 1]} : vector<2x32xf32> to vector<1x32xf32>
        %c0_65 = arith.constant 0 : index
        %c0_66 = arith.constant 0 : index
        %121 = vector.load %arg6[%c0_65, %c0_66] : memref<2x32xf32, #tpu.memory_space<vmem>>, vector<1x32xf32>
        tpu.vector_store %arg6[%c0_65, %c0_66], %120 {strides = array<i32>} : memref<2x32xf32, #tpu.memory_space<vmem>>, vector<1x32xf32>,
      } else {
      }
      %c1_62 = arith.constant 1 : index
      %116 = memref.load %arg2[%c1_62] : memref<3xi32, #tpu.memory_space<smem>>
      %c5_i32_63 = arith.constant 5 : i32
      %117 = arith.cmpi eq, %116, %c5_i32_63 : i32
      %118 = arith.extui %117 : i1 to i32
      %c0_i32_64 = arith.constant 0 : i32
      %119 = arith.cmpi ne, %118, %c0_i32_64 : i32
      scf.if %119 {
        %120 = vector.extract_strided_slice %109 {offsets = [1, 0], sizes = [1, 32], strides = [1, 1]} : vector<2x32xf32> to vector<1x32xf32>
        %c1_65 = arith.constant 1 : index
        %c0_66 = arith.constant 0 : index
        %121 = vector.load %arg6[%c1_65, %c0_66] : memref<2x32xf32, #tpu.memory_space<vmem>>, vector<1x32xf32>
        tpu.vector_store %arg6[%c1_65, %c0_66], %120 {strides = array<i32>} : memref<2x32xf32, #tpu.memory_space<vmem>>, vector<1x32xf32>,
      } else {
      }
    } else {
    }
    %c6_i32 = arith.constant 6 : i32
    %59 = arith.cmpi sge, %7, %c6_i32 : i32
    %60 = arith.extui %59 : i1 to i32
    %c0_i32_31 = arith.constant 0 : i32
    %61 = arith.cmpi ne, %60, %c0_i32_31 : i32
    scf.if %61 {
      %c12 = arith.constant 12 : index
      %c0_43 = arith.constant 0 : index
      %80 = vector.load %arg0[%c12, %c0_43] : memref<20x128xf32, #tpu.memory_space<vmem>>, vector<2x128xf32>
      %c0_44 = arith.constant 0 : index
      %c0_45 = arith.constant 0 : index
      %81 = vector.load %arg4[%c0_44, %c0_45] : memref<2x32xf32, #tpu.memory_space<vmem>>, vector<2x32xf32>
      %82 = arith.truncf %81 : vector<2x32xf32> to vector<2x32xbf16>
      %cst_46 = arith.constant dense<0.000000e+00> : vector<2x128xf32>
      %83 = tpu.matmul %82, %1, %cst_46 {dimension_numbers = #tpu.dot_dimension_numbers<[1], [0], [0], [1], [0, 0, 1, 1], [], []>} : vector<2x32xbf16>, vector<32x128xbf16>, vector<2x128xf32> -> vector<2x128xf32>
      %84 = arith.addf %80, %83 : vector<2x128xf32>
      %85 = vector.broadcast %2 : vector<1x128xf32> to vector<2x128xf32>
      %86 = arith.mulf %84, %85 : vector<2x128xf32>
      %87 = math.tanh %86 : vector<2x128xf32>
      %88 = vector.extract_strided_slice %87 {offsets = [0, 0], sizes = [2, 32], strides = [1, 1]} : vector<2x128xf32> to vector<2x32xf32>
      %cst_47 = arith.constant 1.000000e+00 : f32
      %89 = vector.broadcast %cst_47 : f32 to vector<2x32xf32>
      %90 = arith.addf %88, %89 : vector<2x32xf32>
      %cst_48 = arith.constant 5.000000e-01 : f32
      %91 = vector.broadcast %cst_48 : f32 to vector<2x32xf32>
      %92 = arith.mulf %91, %90 : vector<2x32xf32>
      %93 = vector.extract_strided_slice %87 {offsets = [0, 32], sizes = [2, 32], strides = [1, 1]} : vector<2x128xf32> to vector<2x32xf32>
      %cst_49 = arith.constant 1.000000e+00 : f32
      %94 = vector.broadcast %cst_49 : f32 to vector<2x32xf32>
      %95 = arith.addf %93, %94 : vector<2x32xf32>
      %cst_50 = arith.constant 5.000000e-01 : f32
      %96 = vector.broadcast %cst_50 : f32 to vector<2x32xf32>
      %97 = arith.mulf %96, %95 : vector<2x32xf32>
      %98 = vector.extract_strided_slice %87 {offsets = [0, 64], sizes = [2, 32], strides = [1, 1]} : vector<2x128xf32> to vector<2x32xf32>
      %99 = vector.extract_strided_slice %87 {offsets = [0, 96], sizes = [2, 32], strides = [1, 1]} : vector<2x128xf32> to vector<2x32xf32>
      %cst_51 = arith.constant 1.000000e+00 : f32
      %100 = vector.broadcast %cst_51 : f32 to vector<2x32xf32>
      %101 = arith.addf %99, %100 : vector<2x32xf32>
      %cst_52 = arith.constant 5.000000e-01 : f32
      %102 = vector.broadcast %cst_52 : f32 to vector<2x32xf32>
      %103 = arith.mulf %102, %101 : vector<2x32xf32>
      %c0_53 = arith.constant 0 : index
      %c0_54 = arith.constant 0 : index
      %104 = vector.load %arg5[%c0_53, %c0_54] : memref<2x32xf32, #tpu.memory_space<vmem>>, vector<2x32xf32>
      %105 = arith.mulf %97, %104 : vector<2x32xf32>
      %106 = arith.mulf %92, %98 : vector<2x32xf32>
      %107 = arith.addf %105, %106 : vector<2x32xf32>
      %108 = math.tanh %107 : vector<2x32xf32>
      %109 = arith.mulf %103, %108 : vector<2x32xf32>
      %c0_55 = arith.constant 0 : index
      %c0_56 = arith.constant 0 : index
      %110 = vector.load %arg5[%c0_55, %c0_56] : memref<2x32xf32, #tpu.memory_space<vmem>>, vector<2x32xf32>
      tpu.vector_store %arg5[%c0_55, %c0_56], %107 {strides = array<i32>} : memref<2x32xf32, #tpu.memory_space<vmem>>, vector<2x32xf32>,
      %c0_57 = arith.constant 0 : index
      %c0_58 = arith.constant 0 : index
      %111 = vector.load %arg4[%c0_57, %c0_58] : memref<2x32xf32, #tpu.memory_space<vmem>>, vector<2x32xf32>
      tpu.vector_store %arg4[%c0_57, %c0_58], %109 {strides = array<i32>} : memref<2x32xf32, #tpu.memory_space<vmem>>, vector<2x32xf32>,
      %c0_59 = arith.constant 0 : index
      %112 = memref.load %arg2[%c0_59] : memref<3xi32, #tpu.memory_space<smem>>
      %c6_i32_60 = arith.constant 6 : i32
      %113 = arith.cmpi eq, %112, %c6_i32_60 : i32
      %114 = arith.extui %113 : i1 to i32
      %c0_i32_61 = arith.constant 0 : i32
      %115 = arith.cmpi ne, %114, %c0_i32_61 : i32
      scf.if %115 {
        %120 = vector.extract_strided_slice %109 {offsets = [0, 0], sizes = [1, 32], strides = [1, 1]} : vector<2x32xf32> to vector<1x32xf32>
        %c0_65 = arith.constant 0 : index
        %c0_66 = arith.constant 0 : index
        %121 = vector.load %arg6[%c0_65, %c0_66] : memref<2x32xf32, #tpu.memory_space<vmem>>, vector<1x32xf32>
        tpu.vector_store %arg6[%c0_65, %c0_66], %120 {strides = array<i32>} : memref<2x32xf32, #tpu.memory_space<vmem>>, vector<1x32xf32>,
      } else {
      }
      %c1_62 = arith.constant 1 : index
      %116 = memref.load %arg2[%c1_62] : memref<3xi32, #tpu.memory_space<smem>>
      %c6_i32_63 = arith.constant 6 : i32
      %117 = arith.cmpi eq, %116, %c6_i32_63 : i32
      %118 = arith.extui %117 : i1 to i32
      %c0_i32_64 = arith.constant 0 : i32
      %119 = arith.cmpi ne, %118, %c0_i32_64 : i32
      scf.if %119 {
        %120 = vector.extract_strided_slice %109 {offsets = [1, 0], sizes = [1, 32], strides = [1, 1]} : vector<2x32xf32> to vector<1x32xf32>
        %c1_65 = arith.constant 1 : index
        %c0_66 = arith.constant 0 : index
        %121 = vector.load %arg6[%c1_65, %c0_66] : memref<2x32xf32, #tpu.memory_space<vmem>>, vector<1x32xf32>
        tpu.vector_store %arg6[%c1_65, %c0_66], %120 {strides = array<i32>} : memref<2x32xf32, #tpu.memory_space<vmem>>, vector<1x32xf32>,
      } else {
      }
    } else {
    }
    %c7_i32 = arith.constant 7 : i32
    %62 = arith.cmpi sge, %7, %c7_i32 : i32
    %63 = arith.extui %62 : i1 to i32
    %c0_i32_32 = arith.constant 0 : i32
    %64 = arith.cmpi ne, %63, %c0_i32_32 : i32
    scf.if %64 {
      %c14 = arith.constant 14 : index
      %c0_43 = arith.constant 0 : index
      %80 = vector.load %arg0[%c14, %c0_43] : memref<20x128xf32, #tpu.memory_space<vmem>>, vector<2x128xf32>
      %c0_44 = arith.constant 0 : index
      %c0_45 = arith.constant 0 : index
      %81 = vector.load %arg4[%c0_44, %c0_45] : memref<2x32xf32, #tpu.memory_space<vmem>>, vector<2x32xf32>
      %82 = arith.truncf %81 : vector<2x32xf32> to vector<2x32xbf16>
      %cst_46 = arith.constant dense<0.000000e+00> : vector<2x128xf32>
      %83 = tpu.matmul %82, %1, %cst_46 {dimension_numbers = #tpu.dot_dimension_numbers<[1], [0], [0], [1], [0, 0, 1, 1], [], []>} : vector<2x32xbf16>, vector<32x128xbf16>, vector<2x128xf32> -> vector<2x128xf32>
      %84 = arith.addf %80, %83 : vector<2x128xf32>
      %85 = vector.broadcast %2 : vector<1x128xf32> to vector<2x128xf32>
      %86 = arith.mulf %84, %85 : vector<2x128xf32>
      %87 = math.tanh %86 : vector<2x128xf32>
      %88 = vector.extract_strided_slice %87 {offsets = [0, 0], sizes = [2, 32], strides = [1, 1]} : vector<2x128xf32> to vector<2x32xf32>
      %cst_47 = arith.constant 1.000000e+00 : f32
      %89 = vector.broadcast %cst_47 : f32 to vector<2x32xf32>
      %90 = arith.addf %88, %89 : vector<2x32xf32>
      %cst_48 = arith.constant 5.000000e-01 : f32
      %91 = vector.broadcast %cst_48 : f32 to vector<2x32xf32>
      %92 = arith.mulf %91, %90 : vector<2x32xf32>
      %93 = vector.extract_strided_slice %87 {offsets = [0, 32], sizes = [2, 32], strides = [1, 1]} : vector<2x128xf32> to vector<2x32xf32>
      %cst_49 = arith.constant 1.000000e+00 : f32
      %94 = vector.broadcast %cst_49 : f32 to vector<2x32xf32>
      %95 = arith.addf %93, %94 : vector<2x32xf32>
      %cst_50 = arith.constant 5.000000e-01 : f32
      %96 = vector.broadcast %cst_50 : f32 to vector<2x32xf32>
      %97 = arith.mulf %96, %95 : vector<2x32xf32>
      %98 = vector.extract_strided_slice %87 {offsets = [0, 64], sizes = [2, 32], strides = [1, 1]} : vector<2x128xf32> to vector<2x32xf32>
      %99 = vector.extract_strided_slice %87 {offsets = [0, 96], sizes = [2, 32], strides = [1, 1]} : vector<2x128xf32> to vector<2x32xf32>
      %cst_51 = arith.constant 1.000000e+00 : f32
      %100 = vector.broadcast %cst_51 : f32 to vector<2x32xf32>
      %101 = arith.addf %99, %100 : vector<2x32xf32>
      %cst_52 = arith.constant 5.000000e-01 : f32
      %102 = vector.broadcast %cst_52 : f32 to vector<2x32xf32>
      %103 = arith.mulf %102, %101 : vector<2x32xf32>
      %c0_53 = arith.constant 0 : index
      %c0_54 = arith.constant 0 : index
      %104 = vector.load %arg5[%c0_53, %c0_54] : memref<2x32xf32, #tpu.memory_space<vmem>>, vector<2x32xf32>
      %105 = arith.mulf %97, %104 : vector<2x32xf32>
      %106 = arith.mulf %92, %98 : vector<2x32xf32>
      %107 = arith.addf %105, %106 : vector<2x32xf32>
      %108 = math.tanh %107 : vector<2x32xf32>
      %109 = arith.mulf %103, %108 : vector<2x32xf32>
      %c0_55 = arith.constant 0 : index
      %c0_56 = arith.constant 0 : index
      %110 = vector.load %arg5[%c0_55, %c0_56] : memref<2x32xf32, #tpu.memory_space<vmem>>, vector<2x32xf32>
      tpu.vector_store %arg5[%c0_55, %c0_56], %107 {strides = array<i32>} : memref<2x32xf32, #tpu.memory_space<vmem>>, vector<2x32xf32>,
      %c0_57 = arith.constant 0 : index
      %c0_58 = arith.constant 0 : index
      %111 = vector.load %arg4[%c0_57, %c0_58] : memref<2x32xf32, #tpu.memory_space<vmem>>, vector<2x32xf32>
      tpu.vector_store %arg4[%c0_57, %c0_58], %109 {strides = array<i32>} : memref<2x32xf32, #tpu.memory_space<vmem>>, vector<2x32xf32>,
      %c0_59 = arith.constant 0 : index
      %112 = memref.load %arg2[%c0_59] : memref<3xi32, #tpu.memory_space<smem>>
      %c7_i32_60 = arith.constant 7 : i32
      %113 = arith.cmpi eq, %112, %c7_i32_60 : i32
      %114 = arith.extui %113 : i1 to i32
      %c0_i32_61 = arith.constant 0 : i32
      %115 = arith.cmpi ne, %114, %c0_i32_61 : i32
      scf.if %115 {
        %120 = vector.extract_strided_slice %109 {offsets = [0, 0], sizes = [1, 32], strides = [1, 1]} : vector<2x32xf32> to vector<1x32xf32>
        %c0_65 = arith.constant 0 : index
        %c0_66 = arith.constant 0 : index
        %121 = vector.load %arg6[%c0_65, %c0_66] : memref<2x32xf32, #tpu.memory_space<vmem>>, vector<1x32xf32>
        tpu.vector_store %arg6[%c0_65, %c0_66], %120 {strides = array<i32>} : memref<2x32xf32, #tpu.memory_space<vmem>>, vector<1x32xf32>,
      } else {
      }
      %c1_62 = arith.constant 1 : index
      %116 = memref.load %arg2[%c1_62] : memref<3xi32, #tpu.memory_space<smem>>
      %c7_i32_63 = arith.constant 7 : i32
      %117 = arith.cmpi eq, %116, %c7_i32_63 : i32
      %118 = arith.extui %117 : i1 to i32
      %c0_i32_64 = arith.constant 0 : i32
      %119 = arith.cmpi ne, %118, %c0_i32_64 : i32
      scf.if %119 {
        %120 = vector.extract_strided_slice %109 {offsets = [1, 0], sizes = [1, 32], strides = [1, 1]} : vector<2x32xf32> to vector<1x32xf32>
        %c1_65 = arith.constant 1 : index
        %c0_66 = arith.constant 0 : index
        %121 = vector.load %arg6[%c1_65, %c0_66] : memref<2x32xf32, #tpu.memory_space<vmem>>, vector<1x32xf32>
        tpu.vector_store %arg6[%c1_65, %c0_66], %120 {strides = array<i32>} : memref<2x32xf32, #tpu.memory_space<vmem>>, vector<1x32xf32>,
      } else {
      }
    } else {
    }
    %c8_i32 = arith.constant 8 : i32
    %65 = arith.cmpi sge, %7, %c8_i32 : i32
    %66 = arith.extui %65 : i1 to i32
    %c0_i32_33 = arith.constant 0 : i32
    %67 = arith.cmpi ne, %66, %c0_i32_33 : i32
    scf.if %67 {
      %c16 = arith.constant 16 : index
      %c0_43 = arith.constant 0 : index
      %80 = vector.load %arg0[%c16, %c0_43] : memref<20x128xf32, #tpu.memory_space<vmem>>, vector<2x128xf32>
      %c0_44 = arith.constant 0 : index
      %c0_45 = arith.constant 0 : index
      %81 = vector.load %arg4[%c0_44, %c0_45] : memref<2x32xf32, #tpu.memory_space<vmem>>, vector<2x32xf32>
      %82 = arith.truncf %81 : vector<2x32xf32> to vector<2x32xbf16>
      %cst_46 = arith.constant dense<0.000000e+00> : vector<2x128xf32>
      %83 = tpu.matmul %82, %1, %cst_46 {dimension_numbers = #tpu.dot_dimension_numbers<[1], [0], [0], [1], [0, 0, 1, 1], [], []>} : vector<2x32xbf16>, vector<32x128xbf16>, vector<2x128xf32> -> vector<2x128xf32>
      %84 = arith.addf %80, %83 : vector<2x128xf32>
      %85 = vector.broadcast %2 : vector<1x128xf32> to vector<2x128xf32>
      %86 = arith.mulf %84, %85 : vector<2x128xf32>
      %87 = math.tanh %86 : vector<2x128xf32>
      %88 = vector.extract_strided_slice %87 {offsets = [0, 0], sizes = [2, 32], strides = [1, 1]} : vector<2x128xf32> to vector<2x32xf32>
      %cst_47 = arith.constant 1.000000e+00 : f32
      %89 = vector.broadcast %cst_47 : f32 to vector<2x32xf32>
      %90 = arith.addf %88, %89 : vector<2x32xf32>
      %cst_48 = arith.constant 5.000000e-01 : f32
      %91 = vector.broadcast %cst_48 : f32 to vector<2x32xf32>
      %92 = arith.mulf %91, %90 : vector<2x32xf32>
      %93 = vector.extract_strided_slice %87 {offsets = [0, 32], sizes = [2, 32], strides = [1, 1]} : vector<2x128xf32> to vector<2x32xf32>
      %cst_49 = arith.constant 1.000000e+00 : f32
      %94 = vector.broadcast %cst_49 : f32 to vector<2x32xf32>
      %95 = arith.addf %93, %94 : vector<2x32xf32>
      %cst_50 = arith.constant 5.000000e-01 : f32
      %96 = vector.broadcast %cst_50 : f32 to vector<2x32xf32>
      %97 = arith.mulf %96, %95 : vector<2x32xf32>
      %98 = vector.extract_strided_slice %87 {offsets = [0, 64], sizes = [2, 32], strides = [1, 1]} : vector<2x128xf32> to vector<2x32xf32>
      %99 = vector.extract_strided_slice %87 {offsets = [0, 96], sizes = [2, 32], strides = [1, 1]} : vector<2x128xf32> to vector<2x32xf32>
      %cst_51 = arith.constant 1.000000e+00 : f32
      %100 = vector.broadcast %cst_51 : f32 to vector<2x32xf32>
      %101 = arith.addf %99, %100 : vector<2x32xf32>
      %cst_52 = arith.constant 5.000000e-01 : f32
      %102 = vector.broadcast %cst_52 : f32 to vector<2x32xf32>
      %103 = arith.mulf %102, %101 : vector<2x32xf32>
      %c0_53 = arith.constant 0 : index
      %c0_54 = arith.constant 0 : index
      %104 = vector.load %arg5[%c0_53, %c0_54] : memref<2x32xf32, #tpu.memory_space<vmem>>, vector<2x32xf32>
      %105 = arith.mulf %97, %104 : vector<2x32xf32>
      %106 = arith.mulf %92, %98 : vector<2x32xf32>
      %107 = arith.addf %105, %106 : vector<2x32xf32>
      %108 = math.tanh %107 : vector<2x32xf32>
      %109 = arith.mulf %103, %108 : vector<2x32xf32>
      %c0_55 = arith.constant 0 : index
      %c0_56 = arith.constant 0 : index
      %110 = vector.load %arg5[%c0_55, %c0_56] : memref<2x32xf32, #tpu.memory_space<vmem>>, vector<2x32xf32>
      tpu.vector_store %arg5[%c0_55, %c0_56], %107 {strides = array<i32>} : memref<2x32xf32, #tpu.memory_space<vmem>>, vector<2x32xf32>,
      %c0_57 = arith.constant 0 : index
      %c0_58 = arith.constant 0 : index
      %111 = vector.load %arg4[%c0_57, %c0_58] : memref<2x32xf32, #tpu.memory_space<vmem>>, vector<2x32xf32>
      tpu.vector_store %arg4[%c0_57, %c0_58], %109 {strides = array<i32>} : memref<2x32xf32, #tpu.memory_space<vmem>>, vector<2x32xf32>,
      %c0_59 = arith.constant 0 : index
      %112 = memref.load %arg2[%c0_59] : memref<3xi32, #tpu.memory_space<smem>>
      %c8_i32_60 = arith.constant 8 : i32
      %113 = arith.cmpi eq, %112, %c8_i32_60 : i32
      %114 = arith.extui %113 : i1 to i32
      %c0_i32_61 = arith.constant 0 : i32
      %115 = arith.cmpi ne, %114, %c0_i32_61 : i32
      scf.if %115 {
        %120 = vector.extract_strided_slice %109 {offsets = [0, 0], sizes = [1, 32], strides = [1, 1]} : vector<2x32xf32> to vector<1x32xf32>
        %c0_65 = arith.constant 0 : index
        %c0_66 = arith.constant 0 : index
        %121 = vector.load %arg6[%c0_65, %c0_66] : memref<2x32xf32, #tpu.memory_space<vmem>>, vector<1x32xf32>
        tpu.vector_store %arg6[%c0_65, %c0_66], %120 {strides = array<i32>} : memref<2x32xf32, #tpu.memory_space<vmem>>, vector<1x32xf32>,
      } else {
      }
      %c1_62 = arith.constant 1 : index
      %116 = memref.load %arg2[%c1_62] : memref<3xi32, #tpu.memory_space<smem>>
      %c8_i32_63 = arith.constant 8 : i32
      %117 = arith.cmpi eq, %116, %c8_i32_63 : i32
      %118 = arith.extui %117 : i1 to i32
      %c0_i32_64 = arith.constant 0 : i32
      %119 = arith.cmpi ne, %118, %c0_i32_64 : i32
      scf.if %119 {
        %120 = vector.extract_strided_slice %109 {offsets = [1, 0], sizes = [1, 32], strides = [1, 1]} : vector<2x32xf32> to vector<1x32xf32>
        %c1_65 = arith.constant 1 : index
        %c0_66 = arith.constant 0 : index
        %121 = vector.load %arg6[%c1_65, %c0_66] : memref<2x32xf32, #tpu.memory_space<vmem>>, vector<1x32xf32>
        tpu.vector_store %arg6[%c1_65, %c0_66], %120 {strides = array<i32>} : memref<2x32xf32, #tpu.memory_space<vmem>>, vector<1x32xf32>,
      } else {
      }
    } else {
    }
    %c9_i32 = arith.constant 9 : i32
    %68 = arith.cmpi sge, %7, %c9_i32 : i32
    %69 = arith.extui %68 : i1 to i32
    %c0_i32_34 = arith.constant 0 : i32
    %70 = arith.cmpi ne, %69, %c0_i32_34 : i32
    scf.if %70 {
      %c18 = arith.constant 18 : index
      %c0_43 = arith.constant 0 : index
      %80 = vector.load %arg0[%c18, %c0_43] : memref<20x128xf32, #tpu.memory_space<vmem>>, vector<2x128xf32>
      %c0_44 = arith.constant 0 : index
      %c0_45 = arith.constant 0 : index
      %81 = vector.load %arg4[%c0_44, %c0_45] : memref<2x32xf32, #tpu.memory_space<vmem>>, vector<2x32xf32>
      %82 = arith.truncf %81 : vector<2x32xf32> to vector<2x32xbf16>
      %cst_46 = arith.constant dense<0.000000e+00> : vector<2x128xf32>
      %83 = tpu.matmul %82, %1, %cst_46 {dimension_numbers = #tpu.dot_dimension_numbers<[1], [0], [0], [1], [0, 0, 1, 1], [], []>} : vector<2x32xbf16>, vector<32x128xbf16>, vector<2x128xf32> -> vector<2x128xf32>
      %84 = arith.addf %80, %83 : vector<2x128xf32>
      %85 = vector.broadcast %2 : vector<1x128xf32> to vector<2x128xf32>
      %86 = arith.mulf %84, %85 : vector<2x128xf32>
      %87 = math.tanh %86 : vector<2x128xf32>
      %88 = vector.extract_strided_slice %87 {offsets = [0, 0], sizes = [2, 32], strides = [1, 1]} : vector<2x128xf32> to vector<2x32xf32>
      %cst_47 = arith.constant 1.000000e+00 : f32
      %89 = vector.broadcast %cst_47 : f32 to vector<2x32xf32>
      %90 = arith.addf %88, %89 : vector<2x32xf32>
      %cst_48 = arith.constant 5.000000e-01 : f32
      %91 = vector.broadcast %cst_48 : f32 to vector<2x32xf32>
      %92 = arith.mulf %91, %90 : vector<2x32xf32>
      %93 = vector.extract_strided_slice %87 {offsets = [0, 32], sizes = [2, 32], strides = [1, 1]} : vector<2x128xf32> to vector<2x32xf32>
      %cst_49 = arith.constant 1.000000e+00 : f32
      %94 = vector.broadcast %cst_49 : f32 to vector<2x32xf32>
      %95 = arith.addf %93, %94 : vector<2x32xf32>
      %cst_50 = arith.constant 5.000000e-01 : f32
      %96 = vector.broadcast %cst_50 : f32 to vector<2x32xf32>
      %97 = arith.mulf %96, %95 : vector<2x32xf32>
      %98 = vector.extract_strided_slice %87 {offsets = [0, 64], sizes = [2, 32], strides = [1, 1]} : vector<2x128xf32> to vector<2x32xf32>
      %99 = vector.extract_strided_slice %87 {offsets = [0, 96], sizes = [2, 32], strides = [1, 1]} : vector<2x128xf32> to vector<2x32xf32>
      %cst_51 = arith.constant 1.000000e+00 : f32
      %100 = vector.broadcast %cst_51 : f32 to vector<2x32xf32>
      %101 = arith.addf %99, %100 : vector<2x32xf32>
      %cst_52 = arith.constant 5.000000e-01 : f32
      %102 = vector.broadcast %cst_52 : f32 to vector<2x32xf32>
      %103 = arith.mulf %102, %101 : vector<2x32xf32>
      %c0_53 = arith.constant 0 : index
      %c0_54 = arith.constant 0 : index
      %104 = vector.load %arg5[%c0_53, %c0_54] : memref<2x32xf32, #tpu.memory_space<vmem>>, vector<2x32xf32>
      %105 = arith.mulf %97, %104 : vector<2x32xf32>
      %106 = arith.mulf %92, %98 : vector<2x32xf32>
      %107 = arith.addf %105, %106 : vector<2x32xf32>
      %108 = math.tanh %107 : vector<2x32xf32>
      %109 = arith.mulf %103, %108 : vector<2x32xf32>
      %c0_55 = arith.constant 0 : index
      %c0_56 = arith.constant 0 : index
      %110 = vector.load %arg5[%c0_55, %c0_56] : memref<2x32xf32, #tpu.memory_space<vmem>>, vector<2x32xf32>
      tpu.vector_store %arg5[%c0_55, %c0_56], %107 {strides = array<i32>} : memref<2x32xf32, #tpu.memory_space<vmem>>, vector<2x32xf32>,
      %c0_57 = arith.constant 0 : index
      %c0_58 = arith.constant 0 : index
      %111 = vector.load %arg4[%c0_57, %c0_58] : memref<2x32xf32, #tpu.memory_space<vmem>>, vector<2x32xf32>
      tpu.vector_store %arg4[%c0_57, %c0_58], %109 {strides = array<i32>} : memref<2x32xf32, #tpu.memory_space<vmem>>, vector<2x32xf32>,
      %c0_59 = arith.constant 0 : index
      %112 = memref.load %arg2[%c0_59] : memref<3xi32, #tpu.memory_space<smem>>
      %c9_i32_60 = arith.constant 9 : i32
      %113 = arith.cmpi eq, %112, %c9_i32_60 : i32
      %114 = arith.extui %113 : i1 to i32
      %c0_i32_61 = arith.constant 0 : i32
      %115 = arith.cmpi ne, %114, %c0_i32_61 : i32
      scf.if %115 {
        %120 = vector.extract_strided_slice %109 {offsets = [0, 0], sizes = [1, 32], strides = [1, 1]} : vector<2x32xf32> to vector<1x32xf32>
        %c0_65 = arith.constant 0 : index
        %c0_66 = arith.constant 0 : index
        %121 = vector.load %arg6[%c0_65, %c0_66] : memref<2x32xf32, #tpu.memory_space<vmem>>, vector<1x32xf32>
        tpu.vector_store %arg6[%c0_65, %c0_66], %120 {strides = array<i32>} : memref<2x32xf32, #tpu.memory_space<vmem>>, vector<1x32xf32>,
      } else {
      }
      %c1_62 = arith.constant 1 : index
      %116 = memref.load %arg2[%c1_62] : memref<3xi32, #tpu.memory_space<smem>>
      %c9_i32_63 = arith.constant 9 : i32
      %117 = arith.cmpi eq, %116, %c9_i32_63 : i32
      %118 = arith.extui %117 : i1 to i32
      %c0_i32_64 = arith.constant 0 : i32
      %119 = arith.cmpi ne, %118, %c0_i32_64 : i32
      scf.if %119 {
        %120 = vector.extract_strided_slice %109 {offsets = [1, 0], sizes = [1, 32], strides = [1, 1]} : vector<2x32xf32> to vector<1x32xf32>
        %c1_65 = arith.constant 1 : index
        %c0_66 = arith.constant 0 : index
        %121 = vector.load %arg6[%c1_65, %c0_66] : memref<2x32xf32, #tpu.memory_space<vmem>>, vector<1x32xf32>
        tpu.vector_store %arg6[%c1_65, %c0_66], %120 {strides = array<i32>} : memref<2x32xf32, #tpu.memory_space<vmem>>, vector<1x32xf32>,
      } else {
      }
    } else {
    }
    %c32 = arith.constant 32 : index
    %c0_35 = arith.constant 0 : index
    %71 = vector.load %arg1[%c32, %c0_35] : memref<66x128xf32, #tpu.memory_space<vmem>>, vector<32x32xf32>
    %c64 = arith.constant 64 : index
    %c0_36 = arith.constant 0 : index
    %72 = vector.load %arg1[%c64, %c0_36] : memref<66x128xf32, #tpu.memory_space<vmem>>, vector<1x32xf32>
    %c0_37 = arith.constant 0 : index
    %c0_38 = arith.constant 0 : index
    %73 = vector.load %arg6[%c0_37, %c0_38] : memref<2x32xf32, #tpu.memory_space<vmem>>, vector<2x32xf32>
    %cst_39 = arith.constant dense<0.000000e+00> : vector<2x32xf32>
    %74 = tpu.matmul %73, %71, %cst_39 {dimension_numbers = #tpu.dot_dimension_numbers<[1], [0], [0], [1], [0, 0, 1, 1], [], []>} : vector<2x32xf32>, vector<32x32xf32>, vector<2x32xf32> -> vector<2x32xf32>
    %75 = vector.broadcast %72 : vector<1x32xf32> to vector<2x32xf32>
    %76 = arith.addf %74, %75 : vector<2x32xf32>
    %cst_40 = arith.constant 0.000000e+00 : f32
    %77 = vector.broadcast %cst_40 : f32 to vector<2x32xf32>
    %78 = arith.maximumf %76, %77 : vector<2x32xf32>
    %c0_41 = arith.constant 0 : index
    %c0_42 = arith.constant 0 : index
    %79 = vector.load %arg3[%c0_41, %c0_42] : memref<2x32xf32, #tpu.memory_space<vmem>>, vector<2x32xf32>
    tpu.vector_store %arg3[%c0_41, %c0_42], %78 {strides = array<i32>} : memref<2x32xf32, #tpu.memory_space<vmem>>, vector<2x32xf32>,
    return
  }
}

</mosaic_0001>

<bundles_post_ra>
// kernel: preprocessor_forward.1
= control target key start
LH: loop header
LB: loop body
LE: loop exit
PB: predicated region body
PF: predicated region fallthrough
CT: control target
= control target key end

     0   :  { %8 = vsyncpa [#allocation7], 0  ;;  %s1625_s0 = inlined_call_operand.vmem [shape: f32[20,128], index: 0, kind: input, shape index: {}]   ;;  %s1626_s1 = inlined_call_operand.vmem [shape: f32[66,128], index: 1, kind: input, shape index: {}]   ;;  %s1627_s2 = inlined_call_operand.vmem [shape: s32[3], index: 2, kind: input, shape index: {}]   ;;  %s1628_s3 = inlined_call_operand.hbm [shape: f32[2,32], index: 3, kind: output, shape index: {}]  }
   0x1   :  { %9 = vsyncpa [#allocation6], 0  ;;  %s20_s14 = sshll.u32 %s1627_s2, 4  ;;  %s21_s14 = int_to_ptr.vmem [resolvable:$true] %s20_s14 }
   0x2   :  { %s1374_s15 = scalar_lea.vmem %s21_s14, 16  ;;  %p1379_p1 = scmp.lt.s32.totalorder %s21_s14, %s21_s14 }
   0x3   :  { %p1375_p0 = scmp.ne.s32.totalorder %s21_s14, %s1374_s15  ;;  %p1380_p2 = scmp.lt.s32.totalorder %s1374_s15, %s1374_s15 }
   0x5   :  { %p1381_p3 = por %p1380_p2, %p1379_p1 }
   0x7   :  { %p1382_p4 = pnand %p1381_p3, %p1375_p0 }
   0x9   :  { %1385 = shalt.err (!%p1382_p4)
}
   0xa   :  { %s1410_s16 = smov [#allocation5]  }
   0xb   :  { %23 = dma.vmem_to_smem %s21_s14, 16, %s1410_s16, [#allocation7]  }
   0xc   :  { %1406 = dma.done.wait [#allocation7], 16  }
   0xd   :  { %1407 = vsyncadd [#allocation7], 4294967280 }
   0xe   :  { %27 = sfence }
   0xf   :  { %v1488_v0 = vld [vmem:[%s1626_s1 + $0x41] ss:$0 sm:$0xff]  ;;  %vm36_vm0 = vcmask 254976   ;;  %v1411_v3 = vmov 0.0   ;;  %s1412_s20 = smov 64   ;;  %s1413_s21 = smov 32  }
  0x10   :  { %v41_v1 = vld [vmem:[%s1625_s0] sm:$0x3]  ;;  %38 = vst.msk [vmem:[#allocation3] sm:$0x3] %vm36_vm0, %v1411_v3  ;;  %39 = vst.msk [vmem:[#allocation4] sm:$0x3] %vm36_vm0, %v1411_v3 }
  0x11   :  { %v46_v2 = vmul.f32 %v1488_v0, %v41_v1  ;;  %37 = vst.msk [vmem:[#allocation2] sm:$0x3] %vm36_vm0, %v1411_v3  ;;  %s1414_s22 = smov 96   ;;  %v29_v16 = vld [vmem:[%s1626_s1] sm:$0xff]  ;;  %v30_v17 = vld [vmem:[%s1626_s1 + $0x8] sm:$0xff]  ;;  %v31_v18 = vld [vmem:[%s1626_s1 + $0x10] sm:$0xff] }
  0x12   :  { %v32_v19 = vld [vmem:[%s1626_s1 + $0x18] sm:$0xff]  ;;  %v1513_v20 = vpack.c.bf16 %v30_v17, %v29_v16  ;;  %s1515_s4 = sld [smem:[#allocation5 + $0x2]] }
  0x13   :  { %1334 = vtanh.f32 %v46_v2  ;;  %v1517_v21 = vpack.c.bf16 %v32_v19, %v31_v18  ;;  %s82_s5 = sld [smem:[#allocation5]] }
  0x17   :  { %v50_v5 = vld [vmem:[#allocation3] sm:$0x3] }
  0x19   :  { %p1117_p5 = scmp.ne.s32.totalorder %s82_s5, 0 }
  0x20   :  { %v1335_v4 = vpop.eup %1334 }
  0x21   :  { %57 = vrot.lane.b32.xlu0 %v1335_v4, %s1412_s20  ;;  %v48_v6 = vadd.f32 1.0, %v1335_v4 }
  0x23   :  { %v49_v7 = vmul.f32 0.5, %v48_v6 }
  0x25   :  { %52 = vrot.lane.b32.xlu0 %v50_v5, %s1413_s21 }
  0x93   :  { %v58_v8 = vpop.permute.xlu0 %57 }
  0x94   :  { %v60_v9 = vmul.f32 %v58_v8, %v49_v7 }
  0x96   :  { %62 = vrot.lane.b32.xlu1 %v60_v9, %s1413_s21 }
  0x97   :  { %v53_v10 = vpop.permute.xlu0 %52 }
  0x98   :  { %v55_v11 = vmul.f32 %v53_v10, %v49_v7 }
 0x108   :  { %v63_v12 = vpop.permute.xlu1 %62 }
 0x109   :  { %v65_v13 = vadd.f32 %v63_v12, %v55_v11 }
 0x10b   :  { %1336 = vtanh.f32 %v65_v13  ;;  %73 = vrot.lane.b32.xlu0 %v65_v13, %s1414_s22 }
 0x118   :  { %v1337_v14 = vpop.eup %1336 }
 0x119   :  { %68 = vrot.lane.b32.xlu1 %v1337_v14, %s1412_s20 }
 0x17d   :  { %v74_v15 = vpop.permute.xlu0 %73 }
 0x17e   :  { %76 = vst.msk [vmem:[#allocation3] sm:$0x3] %vm36_vm0, %v74_v15 }
 0x18b   :  { %v69_v22 = vpop.permute.xlu1 %68 }
 0x18c   :  { %v71_v23 = vmul.f32 %v69_v22, %v49_v7 }
 0x18e   :  { %78 = vrot.lane.b32.xlu1 %v71_v23, %s1413_s21 }
 0x1fd   :  { %86 = sbr.rel (%p1117_p5) target bundleno = 516 (0x204), region = 21 }
 0x200   :  { %v79_v24 = vpop.permute.xlu1 %78 }
 0x201   :  { %81 = vst.msk [vmem:[#allocation2] sm:$0x3] %vm36_vm0, %v79_v24 }
 0x202   :  { %vm87_vm1 = vcmask 253952  }
 0x203   :  { %88 = vst.msk [vmem:[#allocation4] sm:$0x1] %vm87_vm1, %v79_v24 }
 0x204 PF:  { %s1118_s6 = sld [smem:[#allocation5 + $0x1]] }
 0x20a   :  { %p1119_p6 = scmp.ne.s32.totalorder %s1118_s6, 0 }
 0x20c   :  { %93 = sbr.rel (%p1119_p6) target bundleno = 531 (0x213), region = 25 }
 0x211   :  { %vm94_vm2 = vcmask 254977  }
 0x212   :  { %95 = vst.msk [vmem:[#allocation4] sm:$0x2] %vm94_vm2, %v79_v24 }
 0x213 PF:  { %p1120_p7 = scmp.lt.s32.totalorder %s1515_s4, 1 }
 0x214   :  { %s1417_s9 = smov (!%p1120_p7), 64   ;;  %s1418_s10 = smov (!%p1120_p7), 32  }
 0x215   :  { %99 = sbr.rel (%p1120_p7) target bundleno = 1256 (0x4e8), region = 29  ;;  %s1419_s11 = smov (!%p1120_p7), 96  }
 0x216   :  { %s184_s12 = sld [smem:[#allocation5]] (!%p1120_p7) }
 0x21a   :  { %v1415_v25 = vmov 0.0   ;;  %vm1416_vm3 = vmmov 0   ;;  %v101_v26 = vld [vmem:[#allocation2] sm:$0x3]  ;;  %vm103_vm4 = vcmask 261120  }
 0x21b   :  { %1199 = vmatprep.subr.bf16.mxu0 %v1415_v25  ;;  %1203 = vmatprep.mubr.msk.bf16.mxu0 %vm1416_vm3, %v1415_v25  ;;  %v102_v27 = vpack.c.bf16 %v101_v26, %v101_v26  ;;  %v100_v28 = vld [vmem:[%s1625_s0 + $0x2] sm:$0x3] }
 0x21c   :  { %1200 = vmatpush3.bf16.msra.mxu0 %v1517_v21  ;;  %v152_v36 = vld [vmem:[#allocation3] sm:$0x3]  ;;  %p1122_p8 = scmp.ne.s32.totalorder %s184_s12, 1 }
 0x21d   :  { %1201 = vmatprep.subr.bf16.mxu0 %v1415_v25 }
 0x220   :  { %1202 = vmatpush3.bf16.msra.mxu0 %v1513_v20 }
 0x223   :  { %1204 = vmatmul.mubr.msk.bf16.vlgmr.msra.gmra.mxu0 %vm103_vm4, %v102_v27 }
 0x2e3   :  { %v141_v29 = vpop.f32.mrf.mxu0 }
 0x2e4   :  { %v147_v30 = vadd.f32 %v141_v29, %v100_v28 }
 0x2e5   :  { %v1205_v31 = vpop.f32.mrf.mxu0 }
 0x2e6   :  { %v148_v32 = vmul.f32 %v1488_v0, %v147_v30 }
 0x2e7   :  { %v144_v33 = vpop.f32.mrf.mxu0 }
 0x2e8   :  { %1338 = vtanh.f32 %v148_v32 }
 0x2e9   :  { %v1206_v34 = vpop.f32.mrf.mxu0 }
 0x2f5   :  { %v1339_v35 = vpop.eup %1338 }
 0x2f6   :  { %159 = vrot.lane.b32.xlu0 %v1339_v35, %s1417_s9  ;;  %v150_v37 = vadd.f32 1.0, %v1339_v35 }
 0x2f8   :  { %v151_v38 = vmul.f32 0.5, %v150_v37 }
 0x2fa   :  { %154 = vrot.lane.b32.xlu0 %v152_v36, %s1418_s10 }
 0x368   :  { %v160_v39 = vpop.permute.xlu0 %159 }
 0x369   :  { %v162_v40 = vmul.f32 %v160_v39, %v151_v38 }
 0x36b   :  { %164 = vrot.lane.b32.xlu1 %v162_v40, %s1418_s10 }
 0x36c   :  { %v155_v41 = vpop.permute.xlu0 %154 }
 0x36d   :  { %v157_v42 = vmul.f32 %v155_v41, %v151_v38 }
 0x3dd   :  { %v165_v43 = vpop.permute.xlu1 %164 }
 0x3de   :  { %v167_v44 = vadd.f32 %v165_v43, %v157_v42 }
 0x3e0   :  { %1340 = vtanh.f32 %v167_v44  ;;  %175 = vrot.lane.b32.xlu0 %v167_v44, %s1419_s11 }
 0x3ed   :  { %v1341_v45 = vpop.eup %1340 }
 0x3ee   :  { %170 = vrot.lane.b32.xlu1 %v1341_v45, %s1417_s9 }
 0x452   :  { %v176_v46 = vpop.permute.xlu0 %175 }
 0x453   :  { %178 = vst.msk [vmem:[#allocation3] sm:$0x3] %vm36_vm0, %v176_v46 }
 0x460   :  { %v171_v47 = vpop.permute.xlu1 %170 }
 0x461   :  { %v173_v48 = vmul.f32 %v171_v47, %v151_v38 }
 0x463   :  { %180 = vrot.lane.b32.xlu1 %v173_v48, %s1418_s10 }
 0x4d2   :  { %188 = sbr.rel (%p1122_p8) target bundleno = 1241 (0x4d9), region = 33 }
 0x4d5   :  { %v181_v49 = vpop.permute.xlu1 %180 }
 0x4d6   :  { %183 = vst.msk [vmem:[#allocation2] sm:$0x3] %vm36_vm0, %v181_v49 }
 0x4d7   :  { %vm189_vm5 = vcmask 253952  }
 0x4d8   :  { %190 = vst.msk [vmem:[#allocation4] sm:$0x1] %vm189_vm5, %v181_v49 }
 0x4d9 PF:  { %s1123_s13 = sld [smem:[#allocation5 + $0x1]] }
 0x4df   :  { %p1124_p9 = scmp.ne.s32.totalorder %s1123_s13, 1 }
 0x4e1   :  { %195 = sbr.rel (%p1124_p9) target bundleno = 1256 (0x4e8), region = 37 }
 0x4e6   :  { %vm196_vm6 = vcmask 254977  }
 0x4e7   :  { %197 = vst.msk [vmem:[#allocation4] sm:$0x2] %vm196_vm6, %v181_v49 }
 0x4e8 PF:  { %p1125_p10 = scmp.lt.s32.totalorder %s1515_s4, 2 }
 0x4e9   :  { %s1422_s16 = smov (!%p1125_p10), 64   ;;  %s1423_s17 = smov (!%p1125_p10), 32  }
 0x4ea   :  { %201 = sbr.rel (%p1125_p10) target bundleno = 1981 (0x7bd), region = 41  ;;  %s1424_s18 = smov (!%p1125_p10), 96  }
 0x4eb   :  { %s286_s19 = sld [smem:[#allocation5]] (!%p1125_p10) }
 0x4ef   :  { %v1420_v50 = vmov 0.0   ;;  %vm1421_vm7 = vmmov 0   ;;  %v203_v51 = vld [vmem:[#allocation2] sm:$0x3]  ;;  %vm205_vm8 = vcmask 261120  }
 0x4f0   :  { %1207 = vmatprep.subr.bf16.mxu0 %v1420_v50  ;;  %1211 = vmatprep.mubr.msk.bf16.mxu0 %vm1421_vm7, %v1420_v50  ;;  %v204_v52 = vpack.c.bf16 %v203_v51, %v203_v51  ;;  %v202_v53 = vld [vmem:[%s1625_s0 + $0x4] sm:$0x3]  ;;  %v254_v61 = vld [vmem:[#allocation3] sm:$0x3] }
 0x4f1   :  { %1208 = vmatpush3.bf16.msra.mxu0 %v1517_v21  ;;  %p1127_p11 = scmp.ne.s32.totalorder %s286_s19, 2 }
 0x4f2   :  { %1209 = vmatprep.subr.bf16.mxu0 %v1420_v50 }
 0x4f5   :  { %1210 = vmatpush3.bf16.msra.mxu0 %v1513_v20 }
 0x4f8   :  { %1212 = vmatmul.mubr.msk.bf16.vlgmr.msra.gmra.mxu0 %vm205_vm8, %v204_v52 }
 0x5b8   :  { %v243_v54 = vpop.f32.mrf.mxu0 }
 0x5b9   :  { %v249_v55 = vadd.f32 %v243_v54, %v202_v53 }
 0x5ba   :  { %v1213_v56 = vpop.f32.mrf.mxu0 }
 0x5bb   :  { %v250_v57 = vmul.f32 %v1488_v0, %v249_v55 }
 0x5bc   :  { %v246_v58 = vpop.f32.mrf.mxu0 }
 0x5bd   :  { %1342 = vtanh.f32 %v250_v57 }
 0x5be   :  { %v1214_v59 = vpop.f32.mrf.mxu0 }
 0x5ca   :  { %v1343_v60 = vpop.eup %1342 }
 0x5cb   :  { %261 = vrot.lane.b32.xlu0 %v1343_v60, %s1422_s16  ;;  %v252_v62 = vadd.f32 1.0, %v1343_v60 }
 0x5cd   :  { %v253_v63 = vmul.f32 0.5, %v252_v62 }
 0x5cf   :  { %256 = vrot.lane.b32.xlu0 %v254_v61, %s1423_s17 }
 0x63d   :  { %v262_v1 = vpop.permute.xlu0 %261 }
 0x63e   :  { %v264_v2 = vmul.f32 %v262_v1, %v253_v63 }
 0x640   :  { %266 = vrot.lane.b32.xlu1 %v264_v2, %s1423_s17 }
 0x641   :  { %v257_v4 = vpop.permute.xlu0 %256 }
 0x642   :  { %v259_v5 = vmul.f32 %v257_v4, %v253_v63 }
 0x6b2   :  { %v267_v6 = vpop.permute.xlu1 %266 }
 0x6b3   :  { %v269_v7 = vadd.f32 %v267_v6, %v259_v5 }
 0x6b5   :  { %1344 = vtanh.f32 %v269_v7  ;;  %277 = vrot.lane.b32.xlu0 %v269_v7, %s1424_s18 }
 0x6c2   :  { %v1345_v8 = vpop.eup %1344 }
 0x6c3   :  { %272 = vrot.lane.b32.xlu1 %v1345_v8, %s1422_s16 }
 0x727   :  { %v278_v9 = vpop.permute.xlu0 %277 }
 0x728   :  { %280 = vst.msk [vmem:[#allocation3] sm:$0x3] %vm36_vm0, %v278_v9 }
 0x735   :  { %v273_v10 = vpop.permute.xlu1 %272 }
 0x736   :  { %v275_v11 = vmul.f32 %v273_v10, %v253_v63 }
 0x738   :  { %282 = vrot.lane.b32.xlu1 %v275_v11, %s1423_s17 }
 0x7a7   :  { %290 = sbr.rel (%p1127_p11) target bundleno = 1966 (0x7ae), region = 45 }
 0x7aa   :  { %v283_v12 = vpop.permute.xlu1 %282 }
 0x7ab   :  { %285 = vst.msk [vmem:[#allocation2] sm:$0x3] %vm36_vm0, %v283_v12 }
 0x7ac   :  { %vm291_vm9 = vcmask 253952  }
 0x7ad   :  { %292 = vst.msk [vmem:[#allocation4] sm:$0x1] %vm291_vm9, %v283_v12 }
 0x7ae PF:  { %s1128_s2 = sld [smem:[#allocation5 + $0x1]] }
 0x7b4   :  { %p1129_p12 = scmp.ne.s32.totalorder %s1128_s2, 2 }
 0x7b6   :  { %297 = sbr.rel (%p1129_p12) target bundleno = 1981 (0x7bd), region = 49 }
 0x7bb   :  { %vm298_vm10 = vcmask 254977  }
 0x7bc   :  { %299 = vst.msk [vmem:[#allocation4] sm:$0x2] %vm298_vm10, %v283_v12 }
 0x7bd PF:  { %p1130_p13 = scmp.lt.s32.totalorder %s1515_s4, 3 }
 0x7be   :  { %s1427_s22 = smov (!%p1130_p13), 64   ;;  %s1428_s23 = smov (!%p1130_p13), 32  }
 0x7bf   :  { %303 = sbr.rel (%p1130_p13) target bundleno = 2706 (0xa92), region = 53  ;;  %s1429_s24 = smov (!%p1130_p13), 96  }
 0x7c0   :  { %s388_s25 = sld [smem:[#allocation5]] (!%p1130_p13) }
 0x7c4   :  { %v1425_v13 = vmov 0.0   ;;  %vm1426_vm11 = vmmov 0   ;;  %v305_v14 = vld [vmem:[#allocation2] sm:$0x3]  ;;  %vm307_vm12 = vcmask 261120  }
 0x7c5   :  { %1215 = vmatprep.subr.bf16.mxu0 %v1425_v13  ;;  %1219 = vmatprep.mubr.msk.bf16.mxu0 %vm1426_vm11, %v1425_v13  ;;  %v306_v15 = vpack.c.bf16 %v305_v14, %v305_v14  ;;  %v304_v16 = vld [vmem:[%s1625_s0 + $0x6] sm:$0x3]  ;;  %v356_v26 = vld [vmem:[#allocation3] sm:$0x3] }
 0x7c6   :  { %1216 = vmatpush3.bf16.msra.mxu0 %v1517_v21  ;;  %p1132_p0 = scmp.ne.s32.totalorder %s388_s25, 3 }
 0x7c7   :  { %1217 = vmatprep.subr.bf16.mxu0 %v1425_v13 }
 0x7ca   :  { %1218 = vmatpush3.bf16.msra.mxu0 %v1513_v20 }
 0x7cd   :  { %1220 = vmatmul.mubr.msk.bf16.vlgmr.msra.gmra.mxu0 %vm307_vm12, %v306_v15 }
 0x88d   :  { %v345_v17 = vpop.f32.mrf.mxu0 }
 0x88e   :  { %v351_v18 = vadd.f32 %v345_v17, %v304_v16 }
 0x88f   :  { %v1221_v19 = vpop.f32.mrf.mxu0 }
 0x890   :  { %v352_v22 = vmul.f32 %v1488_v0, %v351_v18 }
 0x891   :  { %v348_v23 = vpop.f32.mrf.mxu0 }
 0x892   :  { %1346 = vtanh.f32 %v352_v22 }
 0x893   :  { %v1222_v24 = vpop.f32.mrf.mxu0 }
 0x89f   :  { %v1347_v25 = vpop.eup %1346 }
 0x8a0   :  { %363 = vrot.lane.b32.xlu0 %v1347_v25, %s1427_s22  ;;  %v354_v27 = vadd.f32 1.0, %v1347_v25 }
 0x8a2   :  { %v355_v28 = vmul.f32 0.5, %v354_v27 }
 0x8a4   :  { %358 = vrot.lane.b32.xlu0 %v356_v26, %s1428_s23 }
 0x912   :  { %v364_v29 = vpop.permute.xlu0 %363 }
 0x913   :  { %v366_v30 = vmul.f32 %v364_v29, %v355_v28 }
 0x915   :  { %368 = vrot.lane.b32.xlu1 %v366_v30, %s1428_s23 }
 0x916   :  { %v359_v31 = vpop.permute.xlu0 %358 }
 0x917   :  { %v361_v32 = vmul.f32 %v359_v31, %v355_v28 }
 0x987   :  { %v369_v33 = vpop.permute.xlu1 %368 }
 0x988   :  { %v371_v34 = vadd.f32 %v369_v33, %v361_v32 }
 0x98a   :  { %1348 = vtanh.f32 %v371_v34  ;;  %379 = vrot.lane.b32.xlu0 %v371_v34, %s1429_s24 }
 0x997   :  { %v1349_v35 = vpop.eup %1348 }
 0x998   :  { %374 = vrot.lane.b32.xlu1 %v1349_v35, %s1427_s22 }
 0x9fc   :  { %v380_v36 = vpop.permute.xlu0 %379 }
 0x9fd   :  { %382 = vst.msk [vmem:[#allocation3] sm:$0x3] %vm36_vm0, %v380_v36 }
 0xa0a   :  { %v375_v37 = vpop.permute.xlu1 %374 }
 0xa0b   :  { %v377_v38 = vmul.f32 %v375_v37, %v355_v28 }
 0xa0d   :  { %384 = vrot.lane.b32.xlu1 %v377_v38, %s1428_s23 }
 0xa7c   :  { %392 = sbr.rel (%p1132_p0) target bundleno = 2691 (0xa83), region = 57 }
 0xa7f   :  { %v385_v39 = vpop.permute.xlu1 %384 }
 0xa80   :  { %387 = vst.msk [vmem:[#allocation2] sm:$0x3] %vm36_vm0, %v385_v39 }
 0xa81   :  { %vm393_vm13 = vcmask 253952  }
 0xa82   :  { %394 = vst.msk [vmem:[#allocation4] sm:$0x1] %vm393_vm13, %v385_v39 }
 0xa83 PF:  { %s1133_s26 = sld [smem:[#allocation5 + $0x1]] }
 0xa89   :  { %p1134_p1 = scmp.ne.s32.totalorder %s1133_s26, 3 }
 0xa8b   :  { %399 = sbr.rel (%p1134_p1) target bundleno = 2706 (0xa92), region = 61 }
 0xa90   :  { %vm400_vm14 = vcmask 254977  }
 0xa91   :  { %401 = vst.msk [vmem:[#allocation4] sm:$0x2] %vm400_vm14, %v385_v39 }
 0xa92 PF:  { %p1135_p2 = scmp.lt.s32.totalorder %s1515_s4, 4 }
 0xa93   :  { %s1432_s29 = smov (!%p1135_p2), 64   ;;  %s1433_s30 = smov (!%p1135_p2), 32  }
 0xa94   :  { %405 = sbr.rel (%p1135_p2) target bundleno = 3431 (0xd67), region = 65  ;;  %s1434_s5 = smov (!%p1135_p2), 96  }
 0xa95   :  { %s490_s6 = sld [smem:[#allocation5]] (!%p1135_p2) }
 0xa99   :  { %v1430_v40 = vmov 0.0   ;;  %vm1431_vm15 = vmmov 0   ;;  %v407_v41 = vld [vmem:[#allocation2] sm:$0x3]  ;;  %vm409_vm1 = vcmask 261120  }
 0xa9a   :  { %1223 = vmatprep.subr.bf16.mxu0 %v1430_v40  ;;  %1227 = vmatprep.mubr.msk.bf16.mxu0 %vm1431_vm15, %v1430_v40  ;;  %v408_v42 = vpack.c.bf16 %v407_v41, %v407_v41  ;;  %v406_v43 = vld [vmem:[%s1625_s0 + $0x8] sm:$0x3]  ;;  %v458_v51 = vld [vmem:[#allocation3] sm:$0x3] }
 0xa9b   :  { %1224 = vmatpush3.bf16.msra.mxu0 %v1517_v21  ;;  %p1137_p3 = scmp.ne.s32.totalorder %s490_s6, 4 }
 0xa9c   :  { %1225 = vmatprep.subr.bf16.mxu0 %v1430_v40 }
 0xa9f   :  { %1226 = vmatpush3.bf16.msra.mxu0 %v1513_v20 }
 0xaa2   :  { %1228 = vmatmul.mubr.msk.bf16.vlgmr.msra.gmra.mxu0 %vm409_vm1, %v408_v42 }
 0xb62   :  { %v447_v44 = vpop.f32.mrf.mxu0 }
 0xb63   :  { %v453_v45 = vadd.f32 %v447_v44, %v406_v43 }
 0xb64   :  { %v1229_v46 = vpop.f32.mrf.mxu0 }
 0xb65   :  { %v454_v47 = vmul.f32 %v1488_v0, %v453_v45 }
 0xb66   :  { %v450_v48 = vpop.f32.mrf.mxu0 }
 0xb67   :  { %1350 = vtanh.f32 %v454_v47 }
 0xb68   :  { %v1230_v49 = vpop.f32.mrf.mxu0 }
 0xb74   :  { %v1351_v50 = vpop.eup %1350 }
 0xb75   :  { %465 = vrot.lane.b32.xlu0 %v1351_v50, %s1432_s29  ;;  %v456_v52 = vadd.f32 1.0, %v1351_v50 }
 0xb77   :  { %v457_v53 = vmul.f32 0.5, %v456_v52 }
 0xb79   :  { %460 = vrot.lane.b32.xlu0 %v458_v51, %s1433_s30 }
 0xbe7   :  { %v466_v54 = vpop.permute.xlu0 %465 }
 0xbe8   :  { %v468_v55 = vmul.f32 %v466_v54, %v457_v53 }
 0xbea   :  { %470 = vrot.lane.b32.xlu1 %v468_v55, %s1433_s30 }
 0xbeb   :  { %v461_v56 = vpop.permute.xlu0 %460 }
 0xbec   :  { %v463_v57 = vmul.f32 %v461_v56, %v457_v53 }
 0xc5c   :  { %v471_v58 = vpop.permute.xlu1 %470 }
 0xc5d   :  { %v473_v59 = vadd.f32 %v471_v58, %v463_v57 }
 0xc5f   :  { %1352 = vtanh.f32 %v473_v59  ;;  %481 = vrot.lane.b32.xlu0 %v473_v59, %s1434_s5 }
 0xc6c   :  { %v1353_v60 = vpop.eup %1352 }
 0xc6d   :  { %476 = vrot.lane.b32.xlu1 %v1353_v60, %s1432_s29 }
 0xcd1   :  { %v482_v61 = vpop.permute.xlu0 %481 }
 0xcd2   :  { %484 = vst.msk [vmem:[#allocation3] sm:$0x3] %vm36_vm0, %v482_v61 }
 0xcdf   :  { %v477_v62 = vpop.permute.xlu1 %476 }
 0xce0   :  { %v479_v63 = vmul.f32 %v477_v62, %v457_v53 }
 0xce2   :  { %486 = vrot.lane.b32.xlu1 %v479_v63, %s1433_s30 }
 0xd51   :  { %494 = sbr.rel (%p1137_p3) target bundleno = 3416 (0xd58), region = 69 }
 0xd54   :  { %v487_v1 = vpop.permute.xlu1 %486 }
 0xd55   :  { %489 = vst.msk [vmem:[#allocation2] sm:$0x3] %vm36_vm0, %v487_v1 }
 0xd56   :  { %vm495_vm2 = vcmask 253952  }
 0xd57   :  { %496 = vst.msk [vmem:[#allocation4] sm:$0x1] %vm495_vm2, %v487_v1 }
 0xd58 PF:  { %s1138_s7 = sld [smem:[#allocation5 + $0x1]] }
 0xd5e   :  { %p1139_p4 = scmp.ne.s32.totalorder %s1138_s7, 4 }
 0xd60   :  { %501 = sbr.rel (%p1139_p4) target bundleno = 3431 (0xd67), region = 73 }
 0xd65   :  { %vm502_vm3 = vcmask 254977  }
 0xd66   :  { %503 = vst.msk [vmem:[#allocation4] sm:$0x2] %vm502_vm3, %v487_v1 }
 0xd67 PF:  { %p1140_p5 = scmp.lt.s32.totalorder %s1515_s4, 5 }
 0xd68   :  { %s1437_s10 = smov (!%p1140_p5), 64   ;;  %s1438_s11 = smov (!%p1140_p5), 32  }
 0xd69   :  { %507 = sbr.rel (%p1140_p5) target bundleno = 4156 (0x103c), region = 77  ;;  %s1439_s12 = smov (!%p1140_p5), 96  }
 0xd6a   :  { %s592_s13 = sld [smem:[#allocation5]] (!%p1140_p5) }
 0xd6e   :  { %v1435_v2 = vmov 0.0   ;;  %vm1436_vm4 = vmmov 0   ;;  %v509_v4 = vld [vmem:[#allocation2] sm:$0x3]  ;;  %vm511_vm5 = vcmask 261120  }
 0xd6f   :  { %1231 = vmatprep.subr.bf16.mxu0 %v1435_v2  ;;  %1235 = vmatprep.mubr.msk.bf16.mxu0 %vm1436_vm4, %v1435_v2  ;;  %v510_v5 = vpack.c.bf16 %v509_v4, %v509_v4  ;;  %v508_v6 = vld [vmem:[%s1625_s0 + $0xa] sm:$0x3]  ;;  %v560_v14 = vld [vmem:[#allocation3] sm:$0x3] }
 0xd70   :  { %1232 = vmatpush3.bf16.msra.mxu0 %v1517_v21  ;;  %p1142_p6 = scmp.ne.s32.totalorder %s592_s13, 5 }
 0xd71   :  { %1233 = vmatprep.subr.bf16.mxu0 %v1435_v2 }
 0xd74   :  { %1234 = vmatpush3.bf16.msra.mxu0 %v1513_v20 }
 0xd77   :  { %1236 = vmatmul.mubr.msk.bf16.vlgmr.msra.gmra.mxu0 %vm511_vm5, %v510_v5 }
 0xe37   :  { %v549_v7 = vpop.f32.mrf.mxu0 }
 0xe38   :  { %v555_v8 = vadd.f32 %v549_v7, %v508_v6 }
 0xe39   :  { %v1237_v9 = vpop.f32.mrf.mxu0 }
 0xe3a   :  { %v556_v10 = vmul.f32 %v1488_v0, %v555_v8 }
 0xe3b   :  { %v552_v11 = vpop.f32.mrf.mxu0 }
 0xe3c   :  { %1354 = vtanh.f32 %v556_v10 }
 0xe3d   :  { %v1238_v12 = vpop.f32.mrf.mxu0 }
 0xe49   :  { %v1355_v13 = vpop.eup %1354 }
 0xe4a   :  { %567 = vrot.lane.b32.xlu0 %v1355_v13, %s1437_s10  ;;  %v558_v15 = vadd.f32 1.0, %v1355_v13 }
 0xe4c   :  { %v559_v16 = vmul.f32 0.5, %v558_v15 }
 0xe4e   :  { %562 = vrot.lane.b32.xlu0 %v560_v14, %s1438_s11 }
 0xebc   :  { %v568_v17 = vpop.permute.xlu0 %567 }
 0xebd   :  { %v570_v18 = vmul.f32 %v568_v17, %v559_v16 }
 0xebf   :  { %572 = vrot.lane.b32.xlu1 %v570_v18, %s1438_s11 }
 0xec0   :  { %v563_v19 = vpop.permute.xlu0 %562 }
 0xec1   :  { %v565_v22 = vmul.f32 %v563_v19, %v559_v16 }
 0xf31   :  { %v573_v23 = vpop.permute.xlu1 %572 }
 0xf32   :  { %v575_v24 = vadd.f32 %v573_v23, %v565_v22 }
 0xf34   :  { %1356 = vtanh.f32 %v575_v24  ;;  %583 = vrot.lane.b32.xlu0 %v575_v24, %s1439_s12 }
 0xf41   :  { %v1357_v25 = vpop.eup %1356 }
 0xf42   :  { %578 = vrot.lane.b32.xlu1 %v1357_v25, %s1437_s10 }
 0xfa6   :  { %v584_v26 = vpop.permute.xlu0 %583 }
 0xfa7   :  { %586 = vst.msk [vmem:[#allocation3] sm:$0x3] %vm36_vm0, %v584_v26 }
 0xfb4   :  { %v579_v27 = vpop.permute.xlu1 %578 }
 0xfb5   :  { %v581_v28 = vmul.f32 %v579_v27, %v559_v16 }
 0xfb7   :  { %588 = vrot.lane.b32.xlu1 %v581_v28, %s1438_s11 }
0x1026   :  { %596 = sbr.rel (%p1142_p6) target bundleno = 4141 (0x102d), region = 81 }
0x1029   :  { %v589_v29 = vpop.permute.xlu1 %588 }
0x102a   :  { %591 = vst.msk [vmem:[#allocation2] sm:$0x3] %vm36_vm0, %v589_v29 }
0x102b   :  { %vm597_vm6 = vcmask 253952  }
0x102c   :  { %598 = vst.msk [vmem:[#allocation4] sm:$0x1] %vm597_vm6, %v589_v29 }
0x102d PF:  { %s1143_s14 = sld [smem:[#allocation5 + $0x1]] }
0x1033   :  { %p1144_p7 = scmp.ne.s32.totalorder %s1143_s14, 5 }
0x1035   :  { %603 = sbr.rel (%p1144_p7) target bundleno = 4156 (0x103c), region = 85 }
0x103a   :  { %vm604_vm7 = vcmask 254977  }
0x103b   :  { %605 = vst.msk [vmem:[#allocation4] sm:$0x2] %vm604_vm7, %v589_v29 }
0x103c PF:  { %p1145_p8 = scmp.lt.s32.totalorder %s1515_s4, 6 }
0x103d   :  { %s1442_s17 = smov (!%p1145_p8), 64   ;;  %s1443_s18 = smov (!%p1145_p8), 32  }
0x103e   :  { %609 = sbr.rel (%p1145_p8) target bundleno = 4881 (0x1311), region = 89  ;;  %s1444_s19 = smov (!%p1145_p8), 96  }
0x103f   :  { %s694_s2 = sld [smem:[#allocation5]] (!%p1145_p8) }
0x1043   :  { %v1440_v30 = vmov 0.0   ;;  %vm1441_vm8 = vmmov 0   ;;  %v611_v31 = vld [vmem:[#allocation2] sm:$0x3]  ;;  %vm613_vm9 = vcmask 261120  }
0x1044   :  { %1239 = vmatprep.subr.bf16.mxu0 %v1440_v30  ;;  %1243 = vmatprep.mubr.msk.bf16.mxu0 %vm1441_vm8, %v1440_v30  ;;  %v612_v32 = vpack.c.bf16 %v611_v31, %v611_v31  ;;  %v610_v33 = vld [vmem:[%s1625_s0 + $0xc] sm:$0x3]  ;;  %v662_v41 = vld [vmem:[#allocation3] sm:$0x3] }
0x1045   :  { %1240 = vmatpush3.bf16.msra.mxu0 %v1517_v21  ;;  %p1147_p9 = scmp.ne.s32.totalorder %s694_s2, 6 }
0x1046   :  { %1241 = vmatprep.subr.bf16.mxu0 %v1440_v30 }
0x1049   :  { %1242 = vmatpush3.bf16.msra.mxu0 %v1513_v20 }
0x104c   :  { %1244 = vmatmul.mubr.msk.bf16.vlgmr.msra.gmra.mxu0 %vm613_vm9, %v612_v32 }
0x110c   :  { %v651_v34 = vpop.f32.mrf.mxu0 }
0x110d   :  { %v657_v35 = vadd.f32 %v651_v34, %v610_v33 }
0x110e   :  { %v1245_v36 = vpop.f32.mrf.mxu0 }
0x110f   :  { %v658_v37 = vmul.f32 %v1488_v0, %v657_v35 }
0x1110   :  { %v654_v38 = vpop.f32.mrf.mxu0 }
0x1111   :  { %1358 = vtanh.f32 %v658_v37 }
0x1112   :  { %v1246_v39 = vpop.f32.mrf.mxu0 }
0x111e   :  { %v1359_v40 = vpop.eup %1358 }
0x111f   :  { %669 = vrot.lane.b32.xlu0 %v1359_v40, %s1442_s17  ;;  %v660_v42 = vadd.f32 1.0, %v1359_v40 }
0x1121   :  { %v661_v43 = vmul.f32 0.5, %v660_v42 }
0x1123   :  { %664 = vrot.lane.b32.xlu0 %v662_v41, %s1443_s18 }
0x1191   :  { %v670_v44 = vpop.permute.xlu0 %669 }
0x1192   :  { %v672_v45 = vmul.f32 %v670_v44, %v661_v43 }
0x1194   :  { %674 = vrot.lane.b32.xlu1 %v672_v45, %s1443_s18 }
0x1195   :  { %v665_v46 = vpop.permute.xlu0 %664 }
0x1196   :  { %v667_v47 = vmul.f32 %v665_v46, %v661_v43 }
0x1206   :  { %v675_v48 = vpop.permute.xlu1 %674 }
0x1207   :  { %v677_v49 = vadd.f32 %v675_v48, %v667_v47 }
0x1209   :  { %1360 = vtanh.f32 %v677_v49  ;;  %685 = vrot.lane.b32.xlu0 %v677_v49, %s1444_s19 }
0x1216   :  { %v1361_v50 = vpop.eup %1360 }
0x1217   :  { %680 = vrot.lane.b32.xlu1 %v1361_v50, %s1442_s17 }
0x127b   :  { %v686_v51 = vpop.permute.xlu0 %685 }
0x127c   :  { %688 = vst.msk [vmem:[#allocation3] sm:$0x3] %vm36_vm0, %v686_v51 }
0x1289   :  { %v681_v52 = vpop.permute.xlu1 %680 }
0x128a   :  { %v683_v53 = vmul.f32 %v681_v52, %v661_v43 }
0x128c   :  { %690 = vrot.lane.b32.xlu1 %v683_v53, %s1443_s18 }
0x12fb   :  { %698 = sbr.rel (%p1147_p9) target bundleno = 4866 (0x1302), region = 93 }
0x12fe   :  { %v691_v54 = vpop.permute.xlu1 %690 }
0x12ff   :  { %693 = vst.msk [vmem:[#allocation2] sm:$0x3] %vm36_vm0, %v691_v54 }
0x1300   :  { %vm699_vm10 = vcmask 253952  }
0x1301   :  { %700 = vst.msk [vmem:[#allocation4] sm:$0x1] %vm699_vm10, %v691_v54 }
0x1302 PF:  { %s1148_s20 = sld [smem:[#allocation5 + $0x1]] }
0x1308   :  { %p1149_p10 = scmp.ne.s32.totalorder %s1148_s20, 6 }
0x130a   :  { %705 = sbr.rel (%p1149_p10) target bundleno = 4881 (0x1311), region = 97 }
0x130f   :  { %vm706_vm11 = vcmask 254977  }
0x1310   :  { %707 = vst.msk [vmem:[#allocation4] sm:$0x2] %vm706_vm11, %v691_v54 }
0x1311 PF:  { %p1150_p11 = scmp.lt.s32.totalorder %s1515_s4, 7 }
0x1312   :  { %s1447_s23 = smov (!%p1150_p11), 64   ;;  %s1448_s24 = smov (!%p1150_p11), 32  }
0x1313   :  { %711 = sbr.rel (%p1150_p11) target bundleno = 5606 (0x15e6), region = 101  ;;  %s1449_s25 = smov (!%p1150_p11), 96  }
0x1314   :  { %s796_s26 = sld [smem:[#allocation5]] (!%p1150_p11) }
0x1318   :  { %v1445_v55 = vmov 0.0   ;;  %vm1446_vm12 = vmmov 0   ;;  %v713_v56 = vld [vmem:[#allocation2] sm:$0x3]  ;;  %vm715_vm13 = vcmask 261120  }
0x1319   :  { %1247 = vmatprep.subr.bf16.mxu0 %v1445_v55  ;;  %1251 = vmatprep.mubr.msk.bf16.mxu0 %vm1446_vm12, %v1445_v55  ;;  %v714_v57 = vpack.c.bf16 %v713_v56, %v713_v56  ;;  %v712_v58 = vld [vmem:[%s1625_s0 + $0xe] sm:$0x3]  ;;  %v764_v4 = vld [vmem:[#allocation3] sm:$0x3] }
0x131a   :  { %1248 = vmatpush3.bf16.msra.mxu0 %v1517_v21  ;;  %p1152_p12 = scmp.ne.s32.totalorder %s796_s26, 7 }
0x131b   :  { %1249 = vmatprep.subr.bf16.mxu0 %v1445_v55 }
0x131e   :  { %1250 = vmatpush3.bf16.msra.mxu0 %v1513_v20 }
0x1321   :  { %1252 = vmatmul.mubr.msk.bf16.vlgmr.msra.gmra.mxu0 %vm715_vm13, %v714_v57 }
0x13e1   :  { %v753_v59 = vpop.f32.mrf.mxu0 }
0x13e2   :  { %v759_v60 = vadd.f32 %v753_v59, %v712_v58 }
0x13e3   :  { %v1253_v61 = vpop.f32.mrf.mxu0 }
0x13e4   :  { %v760_v62 = vmul.f32 %v1488_v0, %v759_v60 }
0x13e5   :  { %v756_v63 = vpop.f32.mrf.mxu0 }
0x13e6   :  { %1362 = vtanh.f32 %v760_v62 }
0x13e7   :  { %v1254_v1 = vpop.f32.mrf.mxu0 }
0x13f3   :  { %v1363_v2 = vpop.eup %1362 }
0x13f4   :  { %771 = vrot.lane.b32.xlu0 %v1363_v2, %s1447_s23  ;;  %v762_v5 = vadd.f32 1.0, %v1363_v2 }
0x13f6   :  { %v763_v6 = vmul.f32 0.5, %v762_v5 }
0x13f8   :  { %766 = vrot.lane.b32.xlu0 %v764_v4, %s1448_s24 }
0x1466   :  { %v772_v7 = vpop.permute.xlu0 %771 }
0x1467   :  { %v774_v8 = vmul.f32 %v772_v7, %v763_v6 }
0x1469   :  { %776 = vrot.lane.b32.xlu1 %v774_v8, %s1448_s24 }
0x146a   :  { %v767_v9 = vpop.permute.xlu0 %766 }
0x146b   :  { %v769_v10 = vmul.f32 %v767_v9, %v763_v6 }
0x14db   :  { %v777_v11 = vpop.permute.xlu1 %776 }
0x14dc   :  { %v779_v12 = vadd.f32 %v777_v11, %v769_v10 }
0x14de   :  { %1364 = vtanh.f32 %v779_v12  ;;  %787 = vrot.lane.b32.xlu0 %v779_v12, %s1449_s25 }
0x14eb   :  { %v1365_v13 = vpop.eup %1364 }
0x14ec   :  { %782 = vrot.lane.b32.xlu1 %v1365_v13, %s1447_s23 }
0x1550   :  { %v788_v14 = vpop.permute.xlu0 %787 }
0x1551   :  { %790 = vst.msk [vmem:[#allocation3] sm:$0x3] %vm36_vm0, %v788_v14 }
0x155e   :  { %v783_v15 = vpop.permute.xlu1 %782 }
0x155f   :  { %v785_v16 = vmul.f32 %v783_v15, %v763_v6 }
0x1561   :  { %792 = vrot.lane.b32.xlu1 %v785_v16, %s1448_s24 }
0x15d0   :  { %800 = sbr.rel (%p1152_p12) target bundleno = 5591 (0x15d7), region = 105 }
0x15d3   :  { %v793_v17 = vpop.permute.xlu1 %792 }
0x15d4   :  { %795 = vst.msk [vmem:[#allocation2] sm:$0x3] %vm36_vm0, %v793_v17 }
0x15d5   :  { %vm801_vm14 = vcmask 253952  }
0x15d6   :  { %802 = vst.msk [vmem:[#allocation4] sm:$0x1] %vm801_vm14, %v793_v17 }
0x15d7 PF:  { %s1153_s27 = sld [smem:[#allocation5 + $0x1]] }
0x15dd   :  { %p1154_p13 = scmp.ne.s32.totalorder %s1153_s27, 7 }
0x15df   :  { %807 = sbr.rel (%p1154_p13) target bundleno = 5606 (0x15e6), region = 109 }
0x15e4   :  { %vm808_vm15 = vcmask 254977  }
0x15e5   :  { %809 = vst.msk [vmem:[#allocation4] sm:$0x2] %vm808_vm15, %v793_v17 }
0x15e6 PF:  { %p1155_p0 = scmp.lt.s32.totalorder %s1515_s4, 8 }
0x15e7   :  { %s1452_s30 = smov (!%p1155_p0), 64   ;;  %s1453_s5 = smov (!%p1155_p0), 32  }
0x15e8   :  { %813 = sbr.rel (%p1155_p0) target bundleno = 6331 (0x18bb), region = 113  ;;  %s1454_s6 = smov (!%p1155_p0), 96  }
0x15e9   :  { %s898_s7 = sld [smem:[#allocation5]] (!%p1155_p0) }
0x15ed   :  { %v1450_v18 = vmov 0.0   ;;  %vm1451_vm1 = vmmov 0   ;;  %v815_v19 = vld [vmem:[#allocation2] sm:$0x3]  ;;  %vm817_vm2 = vcmask 261120  }
0x15ee   :  { %1255 = vmatprep.subr.bf16.mxu0 %v1450_v18  ;;  %1259 = vmatprep.mubr.msk.bf16.mxu0 %vm1451_vm1, %v1450_v18  ;;  %v816_v22 = vpack.c.bf16 %v815_v19, %v815_v19  ;;  %v814_v23 = vld [vmem:[%s1625_s0 + $0x10] sm:$0x3]  ;;  %v866_v31 = vld [vmem:[#allocation3] sm:$0x3] }
0x15ef   :  { %1256 = vmatpush3.bf16.msra.mxu0 %v1517_v21  ;;  %p1157_p1 = scmp.ne.s32.totalorder %s898_s7, 8 }
0x15f0   :  { %1257 = vmatprep.subr.bf16.mxu0 %v1450_v18 }
0x15f3   :  { %1258 = vmatpush3.bf16.msra.mxu0 %v1513_v20 }
0x15f6   :  { %1260 = vmatmul.mubr.msk.bf16.vlgmr.msra.gmra.mxu0 %vm817_vm2, %v816_v22 }
0x16b6   :  { %v855_v24 = vpop.f32.mrf.mxu0 }
0x16b7   :  { %v861_v25 = vadd.f32 %v855_v24, %v814_v23 }
0x16b8   :  { %v1261_v26 = vpop.f32.mrf.mxu0 }
0x16b9   :  { %v862_v27 = vmul.f32 %v1488_v0, %v861_v25 }
0x16ba   :  { %v858_v28 = vpop.f32.mrf.mxu0 }
0x16bb   :  { %1366 = vtanh.f32 %v862_v27 }
0x16bc   :  { %v1262_v29 = vpop.f32.mrf.mxu0 }
0x16c8   :  { %v1367_v30 = vpop.eup %1366 }
0x16c9   :  { %873 = vrot.lane.b32.xlu0 %v1367_v30, %s1452_s30  ;;  %v864_v32 = vadd.f32 1.0, %v1367_v30 }
0x16cb   :  { %v865_v33 = vmul.f32 0.5, %v864_v32 }
0x16cd   :  { %868 = vrot.lane.b32.xlu0 %v866_v31, %s1453_s5 }
0x173b   :  { %v874_v34 = vpop.permute.xlu0 %873 }
0x173c   :  { %v876_v35 = vmul.f32 %v874_v34, %v865_v33 }
0x173e   :  { %878 = vrot.lane.b32.xlu1 %v876_v35, %s1453_s5 }
0x173f   :  { %v869_v36 = vpop.permute.xlu0 %868 }
0x1740   :  { %v871_v37 = vmul.f32 %v869_v36, %v865_v33 }
0x17b0   :  { %v879_v38 = vpop.permute.xlu1 %878 }
0x17b1   :  { %v881_v39 = vadd.f32 %v879_v38, %v871_v37 }
0x17b3   :  { %1368 = vtanh.f32 %v881_v39  ;;  %889 = vrot.lane.b32.xlu0 %v881_v39, %s1454_s6 }
0x17c0   :  { %v1369_v40 = vpop.eup %1368 }
0x17c1   :  { %884 = vrot.lane.b32.xlu1 %v1369_v40, %s1452_s30 }
0x1825   :  { %v890_v41 = vpop.permute.xlu0 %889 }
0x1826   :  { %892 = vst.msk [vmem:[#allocation3] sm:$0x3] %vm36_vm0, %v890_v41 }
0x1833   :  { %v885_v42 = vpop.permute.xlu1 %884 }
0x1834   :  { %v887_v43 = vmul.f32 %v885_v42, %v865_v33 }
0x1836   :  { %894 = vrot.lane.b32.xlu1 %v887_v43, %s1453_s5 }
0x18a5   :  { %902 = sbr.rel (%p1157_p1) target bundleno = 6316 (0x18ac), region = 117 }
0x18a8   :  { %v895_v44 = vpop.permute.xlu1 %894 }
0x18a9   :  { %897 = vst.msk [vmem:[#allocation2] sm:$0x3] %vm36_vm0, %v895_v44 }
0x18aa   :  { %vm903_vm3 = vcmask 253952  }
0x18ab   :  { %904 = vst.msk [vmem:[#allocation4] sm:$0x1] %vm903_vm3, %v895_v44 }
0x18ac PF:  { %s1158_s8 = sld [smem:[#allocation5 + $0x1]] }
0x18b2   :  { %p1159_p2 = scmp.ne.s32.totalorder %s1158_s8, 8 }
0x18b4   :  { %909 = sbr.rel (%p1159_p2) target bundleno = 6331 (0x18bb), region = 121 }
0x18b9   :  { %vm910_vm4 = vcmask 254977  }
0x18ba   :  { %911 = vst.msk [vmem:[#allocation4] sm:$0x2] %vm910_vm4, %v895_v44 }
0x18bb PF:  { %p1160_p3 = scmp.lt.s32.totalorder %s1515_s4, 9 }
0x18bc   :  { %s1457_s4 = smov (!%p1160_p3), 64   ;;  %s1458_s11 = smov (!%p1160_p3), 32  }
0x18bd   :  { %915 = sbr.rel (%p1160_p3) target bundleno = 7056 (0x1b90), region = 125  ;;  %s1000_s12 = sld [smem:[#allocation5]] (!%p1160_p3) }
0x18c2   :  { %v1455_v45 = vmov 0.0   ;;  %vm1456_vm5 = vmmov 0   ;;  %v917_v46 = vld [vmem:[#allocation2] sm:$0x3]  ;;  %vm919_vm6 = vcmask 261120  }
0x18c3   :  { %1263 = vmatprep.subr.bf16.mxu0 %v1455_v45  ;;  %1267 = vmatprep.mubr.msk.bf16.mxu0 %vm1456_vm5, %v1455_v45  ;;  %v918_v47 = vpack.c.bf16 %v917_v46, %v917_v46  ;;  %v916_v48 = vld [vmem:[%s1625_s0 + $0x12] sm:$0x3]  ;;  %v968_v55 = vld [vmem:[#allocation3] sm:$0x3]  ;;  %s1459_s0 = smov 96   ;;  %p1162_p4 = scmp.ne.s32.totalorder %s1000_s12, 9 }
0x18c4   :  { %1264 = vmatpush3.bf16.msra.mxu0 %v1517_v21 }
0x18c5   :  { %1265 = vmatprep.subr.bf16.mxu0 %v1455_v45 }
0x18c8   :  { %1266 = vmatpush3.bf16.msra.mxu0 %v1513_v20 }
0x18cb   :  { %1268 = vmatmul.mubr.msk.bf16.vlgmr.msra.gmra.mxu0 %vm919_vm6, %v918_v47 }
0x198b   :  { %v957_v49 = vpop.f32.mrf.mxu0 }
0x198c   :  { %v963_v50 = vadd.f32 %v957_v49, %v916_v48 }
0x198d   :  { %v1269_v51 = vpop.f32.mrf.mxu0 }
0x198e   :  { %v964_v52 = vmul.f32 %v1488_v0, %v963_v50 }
0x198f   :  { %v960_v53 = vpop.f32.mrf.mxu0 }
0x1990   :  { %1370 = vtanh.f32 %v964_v52 }
0x1991   :  { %v1270_v54 = vpop.f32.mrf.mxu0 }
0x199d   :  { %v1371_v21 = vpop.eup %1370 }
0x199e   :  { %975 = vrot.lane.b32.xlu0 %v1371_v21, %s1457_s4  ;;  %v966_v20 = vadd.f32 1.0, %v1371_v21 }
0x19a0   :  { %v967_v56 = vmul.f32 0.5, %v966_v20 }
0x19a2   :  { %970 = vrot.lane.b32.xlu0 %v968_v55, %s1458_s11 }
0x1a10   :  { %v976_v57 = vpop.permute.xlu0 %975 }
0x1a11   :  { %v978_v58 = vmul.f32 %v976_v57, %v967_v56 }
0x1a13   :  { %980 = vrot.lane.b32.xlu1 %v978_v58, %s1458_s11 }
0x1a14   :  { %v971_v59 = vpop.permute.xlu0 %970 }
0x1a15   :  { %v973_v60 = vmul.f32 %v971_v59, %v967_v56 }
0x1a85   :  { %v981_v61 = vpop.permute.xlu1 %980 }
0x1a86   :  { %v983_v62 = vadd.f32 %v981_v61, %v973_v60 }
0x1a88   :  { %1372 = vtanh.f32 %v983_v62  ;;  %991 = vrot.lane.b32.xlu0 %v983_v62, %s1459_s0 }
0x1a95   :  { %v1373_v0 = vpop.eup %1372 }
0x1a96   :  { %986 = vrot.lane.b32.xlu1 %v1373_v0, %s1457_s4 }
0x1afa   :  { %v992_v63 = vpop.permute.xlu0 %991 }
0x1afb   :  { %994 = vst.msk [vmem:[#allocation3] sm:$0x3] %vm36_vm0, %v992_v63 }
0x1b08   :  { %v987_v1 = vpop.permute.xlu1 %986 }
0x1b09   :  { %v989_v2 = vmul.f32 %v987_v1, %v967_v56 }
0x1b0b   :  { %996 = vrot.lane.b32.xlu1 %v989_v2, %s1458_s11 }
0x1b7a   :  { %1004 = sbr.rel (%p1162_p4) target bundleno = 7041 (0x1b81), region = 129 }
0x1b7d   :  { %v997_v4 = vpop.permute.xlu1 %996 }
0x1b7e   :  { %999 = vst.msk [vmem:[#allocation2] sm:$0x3] %vm36_vm0, %v997_v4 }
0x1b7f   :  { %vm1005_vm7 = vcmask 253952  }
0x1b80   :  { %1006 = vst.msk [vmem:[#allocation4] sm:$0x1] %vm1005_vm7, %v997_v4 }
0x1b81 PF:  { %s1163_s13 = sld [smem:[#allocation5 + $0x1]] }
0x1b87   :  { %p1164_p5 = scmp.ne.s32.totalorder %s1163_s13, 9 }
0x1b89   :  { %1011 = sbr.rel (%p1164_p5) target bundleno = 7056 (0x1b90), region = 133 }
0x1b8e   :  { %vm1012_vm8 = vcmask 254977  }
0x1b8f   :  { %1013 = vst.msk [vmem:[#allocation4] sm:$0x2] %vm1012_vm8, %v997_v4 }
0x1b90 PF:  { %1271 = vmatprep.subr.mxu0 %v1411_v3  ;;  %v1017_v5 = vld [vmem:[%s1626_s1 + $0x38] sm:$0xff]  ;;  %v1016_v6 = vld [vmem:[%s1626_s1 + $0x30] sm:$0xff]  ;;  %vm1460_vm9 = vmmov 0   ;;  %v1015_v7 = vld [vmem:[%s1626_s1 + $0x28] sm:$0xff]  ;;  %vm1024_vm10 = vcmask 261120   ;;  %s1461_s23 = smov [#allocation8]  }
0x1b91   :  { %1272 = vmatpush3.msra.mxu0 %v1017_v5  ;;  %1279 = vmatprep.mubr.msk.f32.mxu0 %vm1460_vm9, %v1411_v3  ;;  %v1014_v8 = vld [vmem:[%s1626_s1 + $0x20] sm:$0xff]  ;;  %s1106_s24 = sshll.u32 %s1461_s23, 4  ;;  %s1107_s24 = int_to_ptr.vmem [resolvable:$true] %s1106_s24 }
0x1b92   :  { %1273 = vmatprep.subr.mxu0 %v1411_v3  ;;  %v1165_v10 = vld [vmem:[%s1626_s1 + $0x40] ss:$0 sm:$0xff]  ;;  %s1386_s25 = scalar_lea.vmem %s1107_s24, 32  ;;  %p1391_p7 = scmp.lt.s32.totalorder %s1107_s24, %s1107_s24 }
0x1b93   :  { %1274 = vmatpush3.msra.mxu0 %v1016_v6  ;;  %p1387_p6 = scmp.ne.s32.totalorder %s1107_s24, %s1386_s25  ;;  %p1392_p8 = scmp.lt.s32.totalorder %s1386_s25, %s1386_s25 }
0x1b94   :  { %1275 = vmatprep.subr.mxu0 %v1411_v3 }
0x1b95   :  { %1276 = vmatpush3.msra.mxu0 %v1015_v7  ;;  %p1393_p9 = por %p1392_p8, %p1391_p7 }
0x1b96   :  { %v1019_v9 = vld [vmem:[#allocation4] sm:$0x3]  ;;  %1277 = vmatprep.subr.mxu0 %v1411_v3 }
0x1b97   :  { %1278 = vmatpush3.msra.mxu0 %v1014_v8  ;;  %p1394_p10 = pnand %p1393_p9, %p1387_p6 }
0x1b98   :  { %1280 = vmatmul.mubr.msk.f32.vlgmr.msra.gmra.mxu0 %vm1024_vm10, %v1019_v9 }
0x1c58   :  { %v1094_v11 = vpop.f32.mrf.mxu0 }
0x1c59   :  { %v1095_v12 = vadd.f32 %v1165_v10, %v1094_v11 }
0x1c5a   :  { %v1281_v13 = vpop.f32.mrf.mxu0 }
0x1c5b   :  { %v1098_v14 = vmax.f32 %v1095_v12, 0.0 }
0x1c5d   :  { %1099 = vst.msk [vmem:[#allocation8] sm:$0x3] %vm36_vm0, %v1098_v14 }
0x1c5e   :  { %1397 = shalt.err (!%p1394_p10)
}
0x1c5f   :  { %1109 = dma.vmem_to_hbm [thread:$0]  %s1107_s24, 32, %s1628_s3, [#allocation6]  }
0x1c60   :  { %1408 = dma.done.wait [#allocation6], 32  }
0x1c61   :  { %1409 = vsyncadd [#allocation6], 4294967264 }
0x1c62   :  { %1113 = vsyncpa [#allocation6], 1 }
0x1c63   :  { %1114 = vsyncpa [#allocation7], 1 }

</bundles_post_ra>
